<compile_context>
chip_gen: v7x
topology: tpu7x:2x2x1
jax: 0.10.0
libtpu: 0.0.40
codegen_flags: <defaults>
</compile_context>

<pallas_src>
import jax
import jax.numpy as jnp
import numpy as np
from jax import lax
from jax.experimental import pallas as pl
from jax.experimental.pallas import tpu as pltpu


def _graph_conv_kernel(tail_ref, head_ref, inv_ref, rel_hbm, emb0_hbm,   # inputs
                       res_ref,                                          # output (VMEM-resident)
                       emb_s, neigh_s, gmat_s, smat_s, rel_s, sem):      # scratch
    """Fused n_hops GraphConv. grid = (hop, edge_tile)."""
    h = pl.program_id(0)
    j = pl.program_id(1)
    last_j = pl.num_programs(1) - 1

    Te = tail_ref.shape[0]                  # edge-tile size
    N_pad, C_pad = res_ref.shape
    off = pl.multiple_of(j * Te, Te)        # 128-aligned offset into the edge axis

    # ---- one-time (h==0, j==0): DMA rel + emb0 into residence, init emb / residual ----
    @pl.when(jnp.logical_and(h == 0, j == 0))
    def _():
        cp_rel = pltpu.make_async_copy(rel_hbm, rel_s, sem.at[0])
        cp_emb = pltpu.make_async_copy(emb0_hbm, res_ref, sem.at[1])
        cp_rel.start()
        cp_emb.start()
        cp_emb.wait()
        emb_s[...] = res_ref[...].astype(jnp.bfloat16)   # bf16 shadow of the current embedding
        cp_rel.wait()

    # ---- hop 0 only: build one-hot graph-structure matrices for this edge tile ----
    @pl.when(h == 0)
    def _():
        # gather matrix: gmat[e, n] = (tail[e] == n)   (lane-dense: N_pad multiple of 128)
        iota_g = lax.broadcasted_iota(jnp.int32, (Te, N_pad), 1)
        gmat_s[pl.ds(off, Te), :] = (iota_g == tail_ref[...]).astype(jnp.bfloat16)
        # scatter matrix: smat[n, e] = (head[e] == n)  (padded head id == N_pad -> all-zero col)
        iota_s = lax.broadcasted_iota(jnp.int32, (N_pad, Te), 0)
        smat_s[:, pl.ds(off, Te)] = (iota_s == head_ref[...]).astype(jnp.bfloat16)

    # ---- gather emb[tail] (bf16 MXU, f32 acc), scale by relation emb, stage as bf16 ----
    g_tile = gmat_s[pl.ds(off, Te), :]                                         # [Te, N_pad] bf16
    gathered = jnp.dot(g_tile, emb_s[...], preferred_element_type=jnp.float32) # [Te, C_pad] f32
    neigh_s[pl.ds(off, Te), :] = (
        gathered * rel_s[pl.ds(off, Te), :].astype(jnp.float32)
    ).astype(jnp.bfloat16)                                                     # padded edges: rel==0

    # ---- hop finalize: ONE scatter matmul over all edges, mean, L2-normalize, residual ----
    @pl.when(j == last_j)
    def _():
        acc = jnp.dot(smat_s[...], neigh_s[...],
                      preferred_element_type=jnp.float32)        # [N_pad, C_pad] f32 (MXU K-acc)
        agg = acc * inv_ref[...]                                 # scatter_mean via precomputed 1/deg
        sumsq = jnp.sum(agg * agg, axis=1, keepdims=True)
        normed = agg * lax.rsqrt(jnp.maximum(sumsq, 1e-24))      # == x / max(||x||, 1e-12)
        emb_s[...] = normed.astype(jnp.bfloat16)
        res_ref[...] = res_ref[...] + normed


def graph_conv_forward(entity_emb, edge_index, edge_type, weight, n_hops, *, edge_tile=256):
    """GraphConv.forward with mess_dropout=False, node_dropout=False."""
    N, C = entity_emb.shape
    E = edge_index.shape[1]

    C_pad = max(128, ((C + 127) // 128) * 128)        # lane-dense channels
    N_pad = max(128, ((N + 127) // 128) * 128)        # lane-dense one-hots / full MXU contraction
    E_pad = ((E + edge_tile - 1) // edge_tile) * edge_tile
    n_edge_tiles = E_pad // edge_tile

    head = edge_index[0].astype(jnp.int32)
    tail = edge_index[1].astype(jnp.int32)
    etype = edge_type.astype(jnp.int32)

    # ---- hop-invariant precompute (hoisted out of the kernel hot loop) ----
    # relation embedding per edge (real XLA gather); padded edges/channels -> exact zeros (bf16)
    rel = jnp.pad(weight.astype(jnp.float32)[etype - 1],
                  ((0, E_pad - E), (0, C_pad - C))).astype(jnp.bfloat16)
    # Padding invariants: padded head id == N_pad (> any real node id => all-zero scatter col);
    # padded tail id == 0 but its rel row is exactly zero => zero message.
    assert N_pad >= N
    head_p = jnp.pad(head, (0, E_pad - E), constant_values=N_pad)
    tail_p = jnp.pad(tail, (0, E_pad - E), constant_values=0)

    counts = jax.ops.segment_sum(jnp.ones((E,), jnp.float32), head, num_segments=N_pad)
    inv_deg = jnp.where(counts > 0, 1.0 / jnp.maximum(counts, 1.0), 0.0).reshape(N_pad, 1)

    emb0 = jnp.pad(entity_emb.astype(jnp.float32), ((0, N_pad - N), (0, C_pad - C)))

    head_row = head_p.reshape(1, E_pad)
    tail_col = tail_p.reshape(E_pad, 1)

    # ---- generation-aware VMEM budget ----
    resident = (2 * N_pad * C_pad * 4          # residual output block (+ headroom)
                + N_pad * C_pad * 2            # emb_s (bf16)
                + 2 * E_pad * C_pad * 2        # neigh_s + rel_s (bf16)
                + 2 * E_pad * N_pad * 2)       # gather + scatter one-hots (bf16)
    vmem_cap = 64 * 1024 * 1024                # conservative (v7x) fallback
    try:
        vmem_cap = int(pltpu.get_tpu_info().vmem_capacity_bytes)
    except Exception:
        pass
    vmem_limit = int(min(vmem_cap * 7 // 8,
                         max(32 * 1024 * 1024, 2 * resident + (8 << 20))))

    res = pl.pallas_call(
        _graph_conv_kernel,
        out_shape=jax.ShapeDtypeStruct((N_pad, C_pad), jnp.float32),
        grid_spec=pltpu.PrefetchScalarGridSpec(
            num_scalar_prefetch=0,
            grid=(int(n_hops), n_edge_tiles),
            in_specs=[
                pl.BlockSpec((edge_tile, 1), lambda h, j: (j, 0)),        # tail (edge-tiled)
                pl.BlockSpec((1, edge_tile), lambda h, j: (0, j)),        # head (edge-tiled)
                pl.BlockSpec((N_pad, 1), lambda h, j: (0, 0)),            # 1/in-degree (resident)
                pl.BlockSpec(memory_space=pl.ANY),                        # relation emb (HBM, copied once)
                pl.BlockSpec(memory_space=pl.ANY),                        # emb0 (HBM, copied once)
            ],
            out_specs=pl.BlockSpec((N_pad, C_pad), lambda h, j: (0, 0)),  # residual (resident)
            scratch_shapes=[
                pltpu.VMEM((N_pad, C_pad), jnp.bfloat16),   # current entity_emb (bf16 shadow)
                pltpu.VMEM((E_pad, C_pad), jnp.bfloat16),   # staged per-edge messages
                pltpu.VMEM((E_pad, N_pad), jnp.bfloat16),   # gather one-hot (tail), built once
                pltpu.VMEM((N_pad, E_pad), jnp.bfloat16),   # scatter one-hot (head), built once
                pltpu.VMEM((E_pad, C_pad), jnp.bfloat16),   # resident relation embeddings
                pltpu.SemaphoreType.DMA((2,)),              # one-time rel / emb0 copies
            ],
        ),
        compiler_params=pltpu.CompilerParams(
            dimension_semantics=("arbitrary", "arbitrary"),
            vmem_limit_bytes=vmem_limit,
        ),
    )(tail_col, head_row, inv_deg, rel, emb0)

    return res[:N, :C]


def _ref_forward(emb0, edge_index, edge_type, weight, n_hops):
    """Pure-JAX f32 reference mirroring GraphConv.forward (mess_dropout=False)."""
    head, tail = edge_index[0], edge_index[1]
    N = emb0.shape[0]
    emb, res = emb0, emb0
    for _ in range(n_hops):
        neigh = emb[tail] * weight[edge_type - 1]
        summed = jax.ops.segment_sum(neigh, head, num_segments=N)
        counts = jax.ops.segment_sum(jnp.ones((neigh.shape[0],), jnp.float32),
                                     head, num_segments=N)
        agg = jnp.where(counts[:, None] > 0,
                        summed / jnp.maximum(counts[:, None], 1.0), 0.0)
        nrm = jnp.maximum(jnp.linalg.norm(agg, axis=1, keepdims=True), 1e-12)
        emb = agg / nrm
        res = res + emb
    return res


if __name__ == "__main__":
    # Module hyper-params (small, consistent with GraphConv.__init__ shapes)
    n_entities, channel = 64, 32
    n_edges = 512                 # 2 edge tiles of 256 -> exercises staging + multi-tile path
    n_relations = 5               # weight: (n_relations - 1, channel) = (4, 32)
    n_factors = 4                 # disen_weight_att: (4, 4) -- unused in forward
    n_hops = 2
    n_users = 8                   # unused in the aggregation math

    key = jax.random.PRNGKey(0)
    k1, k2, k3, k4, k5, k6 = jax.random.split(key, 6)

    entity_emb = jax.random.normal(k1, (n_entities, channel), dtype=jnp.float32)
    head = jax.random.randint(k2, (n_edges,), 0, n_entities, dtype=jnp.int32)
    tail = jax.random.randint(k3, (n_edges,), 0, n_entities, dtype=jnp.int32)
    edge_index = jnp.stack([head, tail], axis=0)                       # [2, E]
    edge_type = jax.random.randint(k4, (n_edges,), 1, n_relations,     # in [1, n_relations-1]
                                   dtype=jnp.int32)

    # xavier_uniform_ deterministic re-init of module parameters
    w_bound = float(np.sqrt(6.0 / ((n_relations - 1) + channel)))
    weight = jax.random.uniform(k5, (n_relations - 1, channel),
                                minval=-w_bound, maxval=w_bound, dtype=jnp.float32)
    d_bound = float(np.sqrt(6.0 / (n_factors + (n_relations - 1))))
    disen_weight_att = jax.random.uniform(k6, (n_factors, n_relations - 1),
                                          minval=-d_bound, maxval=d_bound,
                                          dtype=jnp.float32)  # unused in forward

    out = graph_conv_forward(entity_emb, edge_index, edge_type, weight, n_hops)
    out = jax.block_until_ready(out)

    ref = _ref_forward(entity_emb, edge_index, edge_type, weight, n_hops)
    # bf16 MXU feeds / bf16 message staging -> relaxed tolerance vs. the pure-f32 reference.
    assert np.allclose(np.asarray(out), np.asarray(ref), atol=2e-2, rtol=2e-2), \
        "Pallas output mismatch vs. pure-JAX reference"

    print("KERNEL_OK")
</pallas_src>

<mosaic_0001>
module attributes {stable_mosaic.version = 11 : i64} {
  func.func @_graph_conv_kernel(%arg0: i32, %arg1: i32, %arg2: memref<256x1xi32, #tpu.memory_space<vmem>>, %arg3: memref<1x256xi32, #tpu.memory_space<vmem>>, %arg4: memref<128x1xf32, #tpu.memory_space<vmem>>, %arg5: memref<512x128xbf16, #tpu.memory_space<any>>, %arg6: memref<128x128xf32, #tpu.memory_space<any>>, %arg7: memref<128x128xf32, #tpu.memory_space<vmem>>, %arg8: memref<128x128xbf16, #tpu.memory_space<vmem>>, %arg9: memref<512x128xbf16, #tpu.memory_space<vmem>>, %arg10: memref<512x128xbf16, #tpu.memory_space<vmem>>, %arg11: memref<128x512xbf16, #tpu.memory_space<vmem>>, %arg12: memref<512x128xbf16, #tpu.memory_space<vmem>>, %arg13: memref<2x!tpu.dma_semaphore, #tpu.memory_space<semaphore_mem>>) attributes {dimension_semantics = [#tpu.dimension_semantics<arbitrary>, #tpu.dimension_semantics<arbitrary>], iteration_bounds = array<i64: 2, 2>, scalar_prefetch = 0 : i64, scratch_operands = 6 : i64, tpu.core_type = #tpu.core_type<tc>, window_params = [{transform_indices = @transform_0, window_bounds = array<i64: 256, 1>}, {transform_indices = @transform_1, window_bounds = array<i64: 1, 256>}, {pipeline_mode = #tpu.pipeline_mode<synchronous>, transform_indices = @transform_2, window_bounds = array<i64: 128, 1>}, {}, {}, {pipeline_mode = #tpu.pipeline_mode<synchronous>, transform_indices = @transform_5, window_bounds = array<i64: 128, 128>}]} {
    %c256_i32 = arith.constant 256 : i32
    %0 = arith.muli %arg1, %c256_i32 : i32
    %1 = tpu.assume_multiple %0, 256 : i32
    %c0_i32 = arith.constant 0 : i32
    %2 = arith.cmpi eq, %arg0, %c0_i32 : i32
    %c0_i32_0 = arith.constant 0 : i32
    %3 = arith.cmpi eq, %arg1, %c0_i32_0 : i32
    %4 = arith.andi %2, %3 : i1
    %5 = arith.extui %4 : i1 to i32
    %c0_i32_1 = arith.constant 0 : i32
    %6 = arith.cmpi ne, %5, %c0_i32_1 : i32
    scf.if %6 {
      %c0_i32_9 = arith.constant 0 : i32
      %24 = tpu.memref_slice %arg13[%c0_i32_9] : memref<2x!tpu.dma_semaphore, #tpu.memory_space<semaphore_mem>> -> memref<1x!tpu.dma_semaphore, #tpu.memory_space<semaphore_mem>>
      %25 = tpu.memref_squeeze %24 : memref<1x!tpu.dma_semaphore, #tpu.memory_space<semaphore_mem>> -> memref<!tpu.dma_semaphore, #tpu.memory_space<semaphore_mem>>
      tpu.enqueue_dma source(%arg5 : memref<512x128xbf16, #tpu.memory_space<any>>) target(%arg12 : memref<512x128xbf16, #tpu.memory_space<vmem>>) target_semaphore(%25 : memref<!tpu.dma_semaphore, #tpu.memory_space<semaphore_mem>>)
      %c1_i32_10 = arith.constant 1 : i32
      %26 = tpu.memref_slice %arg13[%c1_i32_10] : memref<2x!tpu.dma_semaphore, #tpu.memory_space<semaphore_mem>> -> memref<1x!tpu.dma_semaphore, #tpu.memory_space<semaphore_mem>>
      %27 = tpu.memref_squeeze %26 : memref<1x!tpu.dma_semaphore, #tpu.memory_space<semaphore_mem>> -> memref<!tpu.dma_semaphore, #tpu.memory_space<semaphore_mem>>
      tpu.enqueue_dma source(%arg6 : memref<128x128xf32, #tpu.memory_space<any>>) target(%arg7 : memref<128x128xf32, #tpu.memory_space<vmem>>) target_semaphore(%27 : memref<!tpu.dma_semaphore, #tpu.memory_space<semaphore_mem>>)
      %c1_i32_11 = arith.constant 1 : i32
      %28 = tpu.memref_slice %arg13[%c1_i32_11] : memref<2x!tpu.dma_semaphore, #tpu.memory_space<semaphore_mem>> -> memref<1x!tpu.dma_semaphore, #tpu.memory_space<semaphore_mem>>
      %29 = tpu.memref_squeeze %28 : memref<1x!tpu.dma_semaphore, #tpu.memory_space<semaphore_mem>> -> memref<!tpu.dma_semaphore, #tpu.memory_space<semaphore_mem>>
      tpu.wait_dma2 semaphore(%29 : memref<!tpu.dma_semaphore, #tpu.memory_space<semaphore_mem>>) src(%arg6 : memref<128x128xf32, #tpu.memory_space<any>>) dst(%arg7 : memref<128x128xf32, #tpu.memory_space<vmem>>)
      %c0_12 = arith.constant 0 : index
      %c0_13 = arith.constant 0 : index
      %30 = vector.load %arg7[%c0_12, %c0_13] : memref<128x128xf32, #tpu.memory_space<vmem>>, vector<128x128xf32>
      %31 = arith.truncf %30 : vector<128x128xf32> to vector<128x128xbf16>
      %c0_14 = arith.constant 0 : index
      %c0_15 = arith.constant 0 : index
      %32 = vector.load %arg8[%c0_14, %c0_15] : memref<128x128xbf16, #tpu.memory_space<vmem>>, vector<128x128xbf16>
      tpu.vector_store %arg8[%c0_14, %c0_15], %31 {strides = array<i32>} : memref<128x128xbf16, #tpu.memory_space<vmem>>, vector<128x128xbf16>,
      %c0_i32_16 = arith.constant 0 : i32
      %33 = tpu.memref_slice %arg13[%c0_i32_16] : memref<2x!tpu.dma_semaphore, #tpu.memory_space<semaphore_mem>> -> memref<1x!tpu.dma_semaphore, #tpu.memory_space<semaphore_mem>>
      %34 = tpu.memref_squeeze %33 : memref<1x!tpu.dma_semaphore, #tpu.memory_space<semaphore_mem>> -> memref<!tpu.dma_semaphore, #tpu.memory_space<semaphore_mem>>
      tpu.wait_dma2 semaphore(%34 : memref<!tpu.dma_semaphore, #tpu.memory_space<semaphore_mem>>) src(%arg5 : memref<512x128xbf16, #tpu.memory_space<any>>) dst(%arg12 : memref<512x128xbf16, #tpu.memory_space<vmem>>)
    } else {
    }
    %c0_i32_2 = arith.constant 0 : i32
    %7 = arith.cmpi eq, %arg0, %c0_i32_2 : i32
    %8 = arith.extui %7 : i1 to i32
    %c0_i32_3 = arith.constant 0 : i32
    %9 = arith.cmpi ne, %8, %c0_i32_3 : i32
    scf.if %9 {
      %24 = tpu.iota {dimensions = array<i32: 1>} : vector<256x128xi32>
      %c0_9 = arith.constant 0 : index
      %c0_10 = arith.constant 0 : index
      %25 = vector.load %arg2[%c0_9, %c0_10] : memref<256x1xi32, #tpu.memory_space<vmem>>, vector<256x1xi32>
      %26 = vector.broadcast %25 : vector<256x1xi32> to vector<256x128xi32>
      %27 = arith.cmpi eq, %24, %26 : vector<256x128xi32>
      %28 = arith.extui %27 : vector<256x128xi1> to vector<256x128xi32>
      %29 = arith.sitofp %28 : vector<256x128xi32> to vector<256x128xf32>
      %30 = arith.truncf %29 : vector<256x128xf32> to vector<256x128xbf16>
      %31 = arith.index_cast %1 : i32 to index
      %c0_11 = arith.constant 0 : index
      %32 = vector.load %arg10[%31, %c0_11] : memref<512x128xbf16, #tpu.memory_space<vmem>>, vector<256x128xbf16>
      tpu.vector_store %arg10[%31, %c0_11], %30 {strides = array<i32>} : memref<512x128xbf16, #tpu.memory_space<vmem>>, vector<256x128xbf16>,
      %33 = tpu.iota {dimensions = array<i32: 0>} : vector<128x256xi32>
      %c0_12 = arith.constant 0 : index
      %c0_13 = arith.constant 0 : index
      %34 = vector.load %arg3[%c0_12, %c0_13] : memref<1x256xi32, #tpu.memory_space<vmem>>, vector<1x256xi32>
      %35 = vector.broadcast %34 : vector<1x256xi32> to vector<128x256xi32>
      %36 = arith.cmpi eq, %33, %35 : vector<128x256xi32>
      %37 = arith.extui %36 : vector<128x256xi1> to vector<128x256xi32>
      %38 = arith.sitofp %37 : vector<128x256xi32> to vector<128x256xf32>
      %39 = arith.truncf %38 : vector<128x256xf32> to vector<128x256xbf16>
      %c0_14 = arith.constant 0 : index
      %40 = arith.index_cast %1 : i32 to index
      %41 = vector.load %arg11[%c0_14, %40] : memref<128x512xbf16, #tpu.memory_space<vmem>>, vector<128x256xbf16>
      tpu.vector_store %arg11[%c0_14, %40], %39 {strides = array<i32>} : memref<128x512xbf16, #tpu.memory_space<vmem>>, vector<128x256xbf16>,
    } else {
    }
    %10 = arith.index_cast %1 : i32 to index
    %c0 = arith.constant 0 : index
    %11 = vector.load %arg10[%10, %c0] : memref<512x128xbf16, #tpu.memory_space<vmem>>, vector<256x128xbf16>
    %c0_4 = arith.constant 0 : index
    %c0_5 = arith.constant 0 : index
    %12 = vector.load %arg8[%c0_4, %c0_5] : memref<128x128xbf16, #tpu.memory_space<vmem>>, vector<128x128xbf16>
    %cst = arith.constant dense<0.000000e+00> : vector<256x128xf32>
    %13 = tpu.matmul %11, %12, %cst {dimension_numbers = #tpu.dot_dimension_numbers<[1], [0], [0], [1], [0, 0, 1, 1], [], []>} : vector<256x128xbf16>, vector<128x128xbf16>, vector<256x128xf32> -> vector<256x128xf32>
    %14 = arith.index_cast %1 : i32 to index
    %c0_6 = arith.constant 0 : index
    %15 = vector.load %arg12[%14, %c0_6] : memref<512x128xbf16, #tpu.memory_space<vmem>>, vector<256x128xbf16>
    %16 = arith.extf %15 : vector<256x128xbf16> to vector<256x128xf32>
    %17 = arith.mulf %13, %16 : vector<256x128xf32>
    %18 = arith.truncf %17 : vector<256x128xf32> to vector<256x128xbf16>
    %19 = arith.index_cast %1 : i32 to index
    %c0_7 = arith.constant 0 : index
    %20 = vector.load %arg9[%19, %c0_7] : memref<512x128xbf16, #tpu.memory_space<vmem>>, vector<256x128xbf16>
    tpu.vector_store %arg9[%19, %c0_7], %18 {strides = array<i32>} : memref<512x128xbf16, #tpu.memory_space<vmem>>, vector<256x128xbf16>,
    %c1_i32 = arith.constant 1 : i32
    %21 = arith.cmpi eq, %arg1, %c1_i32 : i32
    %22 = arith.extui %21 : i1 to i32
    %c0_i32_8 = arith.constant 0 : i32
    %23 = arith.cmpi ne, %22, %c0_i32_8 : i32
    scf.if %23 {
      %c0_9 = arith.constant 0 : index
      %c0_10 = arith.constant 0 : index
      %24 = vector.load %arg11[%c0_9, %c0_10] : memref<128x512xbf16, #tpu.memory_space<vmem>>, vector<128x512xbf16>
      %c0_11 = arith.constant 0 : index
      %c0_12 = arith.constant 0 : index
      %25 = vector.load %arg9[%c0_11, %c0_12] : memref<512x128xbf16, #tpu.memory_space<vmem>>, vector<512x128xbf16>
      %cst_13 = arith.constant dense<0.000000e+00> : vector<128x128xf32>
      %26 = tpu.matmul %24, %25, %cst_13 {dimension_numbers = #tpu.dot_dimension_numbers<[1], [0], [0], [1], [0, 0, 1, 1], [], []>} : vector<128x512xbf16>, vector<512x128xbf16>, vector<128x128xf32> -> vector<128x128xf32>
      %c0_14 = arith.constant 0 : index
      %c0_15 = arith.constant 0 : index
      %27 = vector.load %arg4[%c0_14, %c0_15] : memref<128x1xf32, #tpu.memory_space<vmem>>, vector<128x1xf32>
      %28 = vector.broadcast %27 : vector<128x1xf32> to vector<128x128xf32>
      %29 = arith.mulf %26, %28 : vector<128x128xf32>
      %30 = arith.mulf %29, %29 : vector<128x128xf32>
      %cst_16 = arith.constant dense<0.000000e+00> : vector<128xf32>
      %31 = vector.multi_reduction <add>, %30, %cst_16 [1] : vector<128x128xf32> to vector<128xf32>
      %32 = vector.shape_cast %31 : vector<128xf32> to vector<128x1xf32>
      %cst_17 = arith.constant 1.000000e-24 : f32
      %33 = vector.broadcast %cst_17 : f32 to vector<128x1xf32>
      %34 = arith.maximumf %32, %33 : vector<128x1xf32>
      %35 = math.rsqrt %34 : vector<128x1xf32>
      %36 = vector.broadcast %35 : vector<128x1xf32> to vector<128x128xf32>
      %37 = arith.mulf %29, %36 : vector<128x128xf32>
      %38 = arith.truncf %37 : vector<128x128xf32> to vector<128x128xbf16>
      %c0_18 = arith.constant 0 : index
      %c0_19 = arith.constant 0 : index
      %39 = vector.load %arg8[%c0_18, %c0_19] : memref<128x128xbf16, #tpu.memory_space<vmem>>, vector<128x128xbf16>
      tpu.vector_store %arg8[%c0_18, %c0_19], %38 {strides = array<i32>} : memref<128x128xbf16, #tpu.memory_space<vmem>>, vector<128x128xbf16>,
      %c0_20 = arith.constant 0 : index
      %c0_21 = arith.constant 0 : index
      %40 = vector.load %arg7[%c0_20, %c0_21] : memref<128x128xf32, #tpu.memory_space<vmem>>, vector<128x128xf32>
      %41 = arith.addf %40, %37 : vector<128x128xf32>
      %c0_22 = arith.constant 0 : index
      %c0_23 = arith.constant 0 : index
      %42 = vector.load %arg7[%c0_22, %c0_23] : memref<128x128xf32, #tpu.memory_space<vmem>>, vector<128x128xf32>
      tpu.vector_store %arg7[%c0_22, %c0_23], %41 {strides = array<i32>} : memref<128x128xf32, #tpu.memory_space<vmem>>, vector<128x128xf32>,
    } else {
    }
    return
  }
  func.func @transform_0(%arg0: i32, %arg1: i32) -> (i32, i32) {
    %c0_i32 = arith.constant 0 : i32
    %c0_i32_0 = arith.constant 0 : i32
    return %arg1, %c0_i32 : i32, i32
  }
  func.func @transform_1(%arg0: i32, %arg1: i32) -> (i32, i32) {
    %c0_i32 = arith.constant 0 : i32
    %c0_i32_0 = arith.constant 0 : i32
    return %c0_i32, %arg1 : i32, i32
  }
  func.func @transform_2(%arg0: i32, %arg1: i32) -> (i32, i32) {
    %c0_i32 = arith.constant 0 : i32
    %c0_i32_0 = arith.constant 0 : i32
    %c0_i32_1 = arith.constant 0 : i32
    return %c0_i32, %c0_i32_0 : i32, i32
  }
  func.func @transform_5(%arg0: i32, %arg1: i32) -> (i32, i32) {
    %c0_i32 = arith.constant 0 : i32
    %c0_i32_0 = arith.constant 0 : i32
    %c0_i32_1 = arith.constant 0 : i32
    return %c0_i32, %c0_i32_0 : i32, i32
  }
}

</mosaic_0001>

<bundles_post_ra>
// kernel: tpu_custom_call.1
= control target key start
LH: loop header
LB: loop body
LE: loop exit
PB: predicated region body
PF: predicated region fallthrough
CT: control target
= control target key end

     0   :  { %10 = vsyncpa [#allocation9], 0  ;;  %s2285_s18 = smov 0   ;;  %s2287_s19 = smov 0   ;;  %s3091_s0 = inlined_call_operand.vmem [shape: s32[512,1], index: 0, kind: input, shape index: {}]   ;;  %s3092_s1 = inlined_call_operand.vmem [shape: s32[1,512], index: 1, kind: input, shape index: {}]   ;;  %s3093_s2 = inlined_call_operand.vmem [shape: f32[128,1], index: 2, kind: input, shape index: {}]   ;;  %s3094_s3 = inlined_call_operand.vmem [shape: bf16[512,128], index: 3, kind: input, shape index: {}]   ;;  %s3095_s4 = inlined_call_operand.vmem [shape: f32[128,128], index: 4, kind: input, shape index: {}]   ;;  %s3096_s5 = inlined_call_operand.hbm [shape: f32[128,128], index: 5, kind: output, shape index: {}]  }
   0x1   :  { %s2289_s20 = smov 0   ;;  %s2291_s21 = smov 0  }
   0x2   :  { %s2293_s22 = smov 0  }
   0x3 LB: > { %s1786_s23 = sadd.s32 4294967295, %s2247_s22   ;;  %s25_s24 = sadd.s32 1, %s2239_s20  ;;  %s2247_s22 = sphi %s2293_s22, %s16_s22   ;;  %s2243_s21 = sphi %s2291_s21, %s3116_s21   ;;  %s2239_s20 = sphi %s2289_s20, %s3115_s20   ;;  %s2235_s19 = sphi %s2287_s19, %s3114_s19   ;;  %s2231_s18 = sphi %s2285_s18, %s3113_s18  }
   0x4   : > { %p26_p0 = scmp.ge.s32.totalorder %s25_s24, 2  ;;  %s28_s25 = sadd.s32 1, %s2243_s21 }
   0x5   : > { %p1789_p1 = scmp.ge.s32.totalorder %s2247_s22, 1  ;;  %p158_p2 = scmp.lt.s32.totalorder %s2247_s22, 5 }
   0x6   : > { %s3118_s24 = smov (%p26_p0, %s25_s24), 0  ;;  %s3120_s25 = smov (!%p26_p0, %s28_s25), %s2243_s21 }
   0x7   : > { %p159_p3 = pnand %p1789_p1, %p158_p2  ;;  %p30_p4 = scmp.ge.s32.totalorder %s3120_s25, 2 }
   0x8   : > { %s1790_s26 = sshll.u32 (!%p159_p3), %s2231_s18, 5  ;;  %s1792_s27 = sshll.u32 (!%p159_p3), %s2231_s18, 1 }
   0x9   : > { %s3122_s25 = smov (%p30_p4, %s3120_s25), 0  ;;  %162 = sbr.rel (%p159_p3) target bundleno = 1035 (0x40b), region = 32 }
   0xa   : > { %p182_p5 = scmp.lt.s32.totalorder (!%p159_p3), %s1790_s26, 63  ;;  %p188_p6 = scmp.lt.s32.totalorder (!%p159_p3), %s1792_s27, 3 }
   0xb   : > { %s2323_s28 = sshll.u32 (!%p159_p3), %s2231_s18, 8  ;;  %p194_p7 = scmp.eq.s32.totalorder (!%p159_p3), %s2235_s19, 0 }
   0xc   : > { %p195_p8 = scmp.eq.s32.totalorder (!%p159_p3), %s2231_s18, 0 }
   0xe   : > { %p196_p9 = pnand (!%p159_p3), %p195_p8, %p194_p7 }
  0x10   : > { %s3124_s26 = smov (!%p182_p5, %s1790_s26), 63  ;;  %s3126_s27 = smov (!%p188_p6, %s1792_s27), 3 }
  0x11   : > { %s1791_s29 = sshll.u32 %s3124_s26, 3  ;;  %s190_s10 = scalar_lea.vmem %s3092_s1, %s3126_s27  ;;  %v232_v0 = vld [vmem:[%s3094_s3] sm:$0xff] (!%p196_p9)  ;;  %v234_v1 = vld [vmem:[%s3094_s3 + $0x8] sm:$0xff] (!%p196_p9)  ;;  %v236_v2 = vld [vmem:[%s3094_s3 + $0x10] sm:$0xff] (!%p196_p9) }
  0x12   : > { %s2332_s7 = scalar_lea.vmem %s3091_s0, %s1791_s29  ;;  %199 = sbr.rel (%p196_p9) target bundleno = 56 (0x38), region = 36  ;;  %233 = vst [vmem:[#allocation6] sm:$0xff] (!%p196_p9), %v232_v0  ;;  %235 = vst [vmem:[#allocation6 + $0x8] sm:$0xff] (!%p196_p9), %v234_v1  ;;  %v238_v3 = vld [vmem:[%s3094_s3 + $0x18] sm:$0xff] (!%p196_p9)  ;;  %v240_v4 = vld [vmem:[%s3094_s3 + $0x20] sm:$0xff] (!%p196_p9) }
  0x13   : > { %237 = vst [vmem:[#allocation6 + $0x10] sm:$0xff] (!%p196_p9), %v236_v2  ;;  %v242_v5 = vld [vmem:[%s3094_s3 + $0x28] sm:$0xff] (!%p196_p9)  ;;  %239 = vst [vmem:[#allocation6 + $0x18] sm:$0xff] (!%p196_p9), %v238_v3  ;;  %v244_v6 = vld [vmem:[%s3094_s3 + $0x30] sm:$0xff] (!%p196_p9) }
  0x14   : > { %241 = vst [vmem:[#allocation6 + $0x20] sm:$0xff] (!%p196_p9), %v240_v4  ;;  %243 = vst [vmem:[#allocation6 + $0x28] sm:$0xff] (!%p196_p9), %v242_v5  ;;  %v246_v7 = vld [vmem:[%s3094_s3 + $0x38] sm:$0xff] (!%p196_p9)  ;;  %v248_v8 = vld [vmem:[%s3094_s3 + $0x40] sm:$0xff] (!%p196_p9) }
  0x15   : > { %245 = vst [vmem:[#allocation6 + $0x30] sm:$0xff] (!%p196_p9), %v244_v6  ;;  %247 = vst [vmem:[#allocation6 + $0x38] sm:$0xff] (!%p196_p9), %v246_v7  ;;  %v250_v9 = vld [vmem:[%s3094_s3 + $0x48] sm:$0xff] (!%p196_p9)  ;;  %v252_v10 = vld [vmem:[%s3094_s3 + $0x50] sm:$0xff] (!%p196_p9) }
  0x16   : > { %249 = vst [vmem:[#allocation6 + $0x40] sm:$0xff] (!%p196_p9), %v248_v8  ;;  %v254_v11 = vld [vmem:[%s3094_s3 + $0x58] sm:$0xff] (!%p196_p9)  ;;  %251 = vst [vmem:[#allocation6 + $0x48] sm:$0xff] (!%p196_p9), %v250_v9  ;;  %v256_v12 = vld [vmem:[%s3094_s3 + $0x60] sm:$0xff] (!%p196_p9) }
  0x17   : > { %253 = vst [vmem:[#allocation6 + $0x50] sm:$0xff] (!%p196_p9), %v252_v10  ;;  %255 = vst [vmem:[#allocation6 + $0x58] sm:$0xff] (!%p196_p9), %v254_v11  ;;  %v258_v13 = vld [vmem:[%s3094_s3 + $0x68] sm:$0xff] (!%p196_p9)  ;;  %v260_v14 = vld [vmem:[%s3094_s3 + $0x70] sm:$0xff] (!%p196_p9) }
  0x18   : > { %257 = vst [vmem:[#allocation6 + $0x60] sm:$0xff] (!%p196_p9), %v256_v12  ;;  %259 = vst [vmem:[#allocation6 + $0x68] sm:$0xff] (!%p196_p9), %v258_v13  ;;  %v262_v15 = vld [vmem:[%s3094_s3 + $0x78] sm:$0xff] (!%p196_p9)  ;;  %v264_v16 = vld [vmem:[%s3094_s3 + $0x80] sm:$0xff] (!%p196_p9) }
  0x19   : > { %261 = vst [vmem:[#allocation6 + $0x70] sm:$0xff] %v260_v14  ;;  %v266_v17 = vld [vmem:[%s3094_s3 + $0x88] sm:$0xff]  ;;  %263 = vst [vmem:[#allocation6 + $0x78] sm:$0xff] %v262_v15  ;;  %v268_v18 = vld [vmem:[%s3094_s3 + $0x90] sm:$0xff] }
  0x1a   : > { %265 = vst [vmem:[#allocation6 + $0x80] sm:$0xff] %v264_v16  ;;  %267 = vst [vmem:[#allocation6 + $0x88] sm:$0xff] %v266_v17  ;;  %v270_v19 = vld [vmem:[%s3094_s3 + $0x98] sm:$0xff]  ;;  %v272_v20 = vld [vmem:[%s3094_s3 + $0xa0] sm:$0xff] }
  0x1b   : > { %269 = vst [vmem:[#allocation6 + $0x90] sm:$0xff] %v268_v18  ;;  %271 = vst [vmem:[#allocation6 + $0x98] sm:$0xff] %v270_v19  ;;  %v274_v21 = vld [vmem:[%s3094_s3 + $0xa8] sm:$0xff]  ;;  %v276_v22 = vld [vmem:[%s3094_s3 + $0xb0] sm:$0xff] }
  0x1c   : > { %273 = vst [vmem:[#allocation6 + $0xa0] sm:$0xff] %v272_v20  ;;  %v278_v23 = vld [vmem:[%s3094_s3 + $0xb8] sm:$0xff]  ;;  %275 = vst [vmem:[#allocation6 + $0xa8] sm:$0xff] %v274_v21  ;;  %v280_v24 = vld [vmem:[%s3094_s3 + $0xc0] sm:$0xff] }
  0x1d   : > { %277 = vst [vmem:[#allocation6 + $0xb0] sm:$0xff] %v276_v22  ;;  %279 = vst [vmem:[#allocation6 + $0xb8] sm:$0xff] %v278_v23  ;;  %v282_v25 = vld [vmem:[%s3094_s3 + $0xc8] sm:$0xff]  ;;  %v284_v26 = vld [vmem:[%s3094_s3 + $0xd0] sm:$0xff] }
  0x1e   : > { %281 = vst [vmem:[#allocation6 + $0xc0] sm:$0xff] %v280_v24  ;;  %283 = vst [vmem:[#allocation6 + $0xc8] sm:$0xff] %v282_v25  ;;  %v286_v27 = vld [vmem:[%s3094_s3 + $0xd8] sm:$0xff]  ;;  %v288_v28 = vld [vmem:[%s3094_s3 + $0xe0] sm:$0xff] }
  0x1f   : > { %285 = vst [vmem:[#allocation6 + $0xd0] sm:$0xff] %v284_v26  ;;  %v290_v29 = vld [vmem:[%s3094_s3 + $0xe8] sm:$0xff]  ;;  %287 = vst [vmem:[#allocation6 + $0xd8] sm:$0xff] %v286_v27  ;;  %v292_v30 = vld [vmem:[%s3094_s3 + $0xf0] sm:$0xff] }
  0x20   : > { %289 = vst [vmem:[#allocation6 + $0xe0] sm:$0xff] %v288_v28  ;;  %291 = vst [vmem:[#allocation6 + $0xe8] sm:$0xff] %v290_v29  ;;  %v294_v31 = vld [vmem:[%s3094_s3 + $0xf8] sm:$0xff] }
  0x21   : > { %293 = vst [vmem:[#allocation6 + $0xf0] sm:$0xff] %v292_v30  ;;  %295 = vst [vmem:[#allocation6 + $0xf8] sm:$0xff] %v294_v31 }
  0x22   : > { %303 = vsyncadd [#allocation7], 4096  ;;  %v337_v32 = vld [vmem:[%s3095_s4] sm:$0xff]  ;;  %v339_v33 = vld [vmem:[%s3095_s4 + $0x8] sm:$0xff] }
  0x23   : > { %338 = vst [vmem:[#allocation8] sm:$0xff] %v337_v32  ;;  %340 = vst [vmem:[#allocation8 + $0x8] sm:$0xff] %v339_v33  ;;  %v341_v34 = vld [vmem:[%s3095_s4 + $0x10] sm:$0xff]  ;;  %v343_v35 = vld [vmem:[%s3095_s4 + $0x18] sm:$0xff] }
  0x24   : > { %v345_v36 = vld [vmem:[%s3095_s4 + $0x20] sm:$0xff]  ;;  %342 = vst [vmem:[#allocation8 + $0x10] sm:$0xff] %v341_v34  ;;  %344 = vst [vmem:[#allocation8 + $0x18] sm:$0xff] %v343_v35  ;;  %v347_v37 = vld [vmem:[%s3095_s4 + $0x28] sm:$0xff] }
  0x25   : > { %346 = vst [vmem:[#allocation8 + $0x20] sm:$0xff] %v345_v36  ;;  %v349_v38 = vld [vmem:[%s3095_s4 + $0x30] sm:$0xff]  ;;  %v351_v39 = vld [vmem:[%s3095_s4 + $0x38] sm:$0xff]  ;;  %348 = vst [vmem:[#allocation8 + $0x28] sm:$0xff] %v347_v37 }
  0x26   : > { %350 = vst [vmem:[#allocation8 + $0x30] sm:$0xff] %v349_v38  ;;  %352 = vst [vmem:[#allocation8 + $0x38] sm:$0xff] %v351_v39  ;;  %v353_v40 = vld [vmem:[%s3095_s4 + $0x40] sm:$0xff]  ;;  %v355_v41 = vld [vmem:[%s3095_s4 + $0x48] sm:$0xff] }
  0x27   : > { %v357_v42 = vld [vmem:[%s3095_s4 + $0x50] sm:$0xff]  ;;  %354 = vst [vmem:[#allocation8 + $0x40] sm:$0xff] %v353_v40  ;;  %356 = vst [vmem:[#allocation8 + $0x48] sm:$0xff] %v355_v41  ;;  %v359_v43 = vld [vmem:[%s3095_s4 + $0x58] sm:$0xff] }
  0x28   : > { %358 = vst [vmem:[#allocation8 + $0x50] sm:$0xff] %v357_v42  ;;  %v361_v44 = vld [vmem:[%s3095_s4 + $0x60] sm:$0xff]  ;;  %v363_v45 = vld [vmem:[%s3095_s4 + $0x68] sm:$0xff]  ;;  %360 = vst [vmem:[#allocation8 + $0x58] sm:$0xff] %v359_v43 }
  0x29   : > { %362 = vst [vmem:[#allocation8 + $0x60] sm:$0xff] %v361_v44  ;;  %364 = vst [vmem:[#allocation8 + $0x68] sm:$0xff] %v363_v45  ;;  %v365_v46 = vld [vmem:[%s3095_s4 + $0x70] sm:$0xff]  ;;  %v367_v47 = vld [vmem:[%s3095_s4 + $0x78] sm:$0xff] }
  0x2a   : > { %366 = vst [vmem:[#allocation8 + $0x70] sm:$0xff] %v365_v46  ;;  %368 = vst [vmem:[#allocation8 + $0x78] sm:$0xff] %v367_v47 }
  0x2b   : > { %376 = vsyncadd [#allocation7 + $0x1], 2048 }
  0x2c   : > { %2221 = dma.done.wait [#allocation7 + $0x1], 2048 }
  0x2d   : > { %2222 = vsyncadd [#allocation7 + $0x1], 4294965248  ;;  %v380_v48 = vld [vmem:[#allocation8] sm:$0xff]  ;;  %v381_v49 = vld [vmem:[#allocation8 + $0x8] sm:$0xff] }
  0x2e   : > { %v382_v50 = vld [vmem:[#allocation8 + $0x10] sm:$0xff]  ;;  %v396_v51 = vpack.c.bf16 %v381_v49, %v380_v48  ;;  %v383_v52 = vld [vmem:[#allocation8 + $0x18] sm:$0xff]  ;;  %v384_v53 = vld [vmem:[#allocation8 + $0x20] sm:$0xff] }
  0x2f   : > { %v385_v54 = vld [vmem:[#allocation8 + $0x28] sm:$0xff]  ;;  %v397_v55 = vpack.c.bf16 %v383_v52, %v382_v50  ;;  %v386_v57 = vld [vmem:[#allocation8 + $0x30] sm:$0xff]  ;;  %v387_v58 = vld [vmem:[#allocation8 + $0x38] sm:$0xff] }
  0x30   : > { %v398_v56 = vpack.c.bf16 %v385_v54, %v384_v53  ;;  %v388_v59 = vld [vmem:[#allocation8 + $0x40] sm:$0xff]  ;;  %404 = vst [vmem:[#allocation2] sm:$0xff] %v396_v51  ;;  %v399_v60 = vpack.c.bf16 %v387_v58, %v386_v57  ;;  %v389_v61 = vld [vmem:[#allocation8 + $0x48] sm:$0xff]  ;;  %v390_v62 = vld [vmem:[#allocation8 + $0x50] sm:$0xff] }
  0x31   : > { %v391_v63 = vld [vmem:[#allocation8 + $0x58] sm:$0xff]  ;;  %405 = vst [vmem:[#allocation2 + $0x8] sm:$0xff] %v397_v55  ;;  %v400_v0 = vpack.c.bf16 %v389_v61, %v388_v59  ;;  %v392_v2 = vld [vmem:[#allocation8 + $0x60] sm:$0xff]  ;;  %v393_v3 = vld [vmem:[#allocation8 + $0x68] sm:$0xff] }
  0x32   : > { %406 = vst [vmem:[#allocation2 + $0x10] sm:$0xff] %v398_v56  ;;  %v401_v1 = vpack.c.bf16 %v391_v63, %v390_v62  ;;  %v394_v4 = vld [vmem:[#allocation8 + $0x70] sm:$0xff]  ;;  %407 = vst [vmem:[#allocation2 + $0x18] sm:$0xff] %v399_v60  ;;  %v402_v5 = vpack.c.bf16 %v393_v3, %v392_v2  ;;  %v395_v6 = vld [vmem:[#allocation8 + $0x78] sm:$0xff] }
  0x33   : > { %408 = vst [vmem:[#allocation2 + $0x20] sm:$0xff] %v400_v0  ;;  %v403_v7 = vpack.c.bf16 %v395_v6, %v394_v4 }
  0x34   : > { %409 = vst [vmem:[#allocation2 + $0x28] sm:$0xff] %v401_v1  ;;  %410 = vst [vmem:[#allocation2 + $0x30] sm:$0xff] %v402_v5 }
  0x35   : > { %411 = vst [vmem:[#allocation2 + $0x38] sm:$0xff] %v403_v7 }
  0x36   : > { %2223 = dma.done.wait [#allocation7], 4096 }
  0x37   : > { %2224 = vsyncadd [#allocation7], 4294963200 }
  0x38 PF: > { %p1794_p10 = scmp.ne.s32.totalorder %s2235_s19, 0 }
  0x39   : > { %v423_v8 = vld [vmem:[%s2332_s7 + $0x10] sm:$0xff] (!%p1794_p10)  ;;  %v421_v9 = vld [vmem:[%s2332_s7] sm:$0xff] (!%p1794_p10)  ;;  %v2249_v10 = vmov (!%p1794_p10), 0   ;;  %v424_v11 = vld [vmem:[%s2332_s7 + $0x18] sm:$0xff] (!%p1794_p10)  ;;  %v419_v13 = vlaneseq (!%p1794_p10)  ;;  %v2250_v41 = vmov (!%p1794_p10), 0.0   ;;  %s819_s27 = sshra.s32 (!%p1794_p10), %s2323_s28, 7 }
  0x3a   : > { %418 = sbr.rel (%p1794_p10) target bundleno = 252 (0xfc), region = 108  ;;  %2140 = vset.pattern.permute.xlu1 (!%p1794_p10), %v2249_v10  ;;  %2139 = vset.pattern.permute.xlu0 (!%p1794_p10), %v2249_v10  ;;  %v422_v12 = vld [vmem:[%s2332_s7 + $0x8] sm:$0xff] (!%p1794_p10)  ;;  %v425_v16 = vld [vmem:[%s2332_s7 + $0x20] sm:$0xff] (!%p1794_p10)  ;;  %v428_v24 = vld [vmem:[%s2332_s7 + $0x38] sm:$0xff] (!%p1794_p10)  ;;  %s661_s26 = sshra.s32 (!%p1794_p10), %s2323_s28, 4 }
  0x3b   : > { %460 = vperm.xlu1 (!%p1794_p10), %2140, %v423_v8   ;;  %454 = vperm.xlu0 (!%p1794_p10), %2139, %v421_v9   ;;  %v2488_v14 = vshrl.u32 (!%p1794_p10), %v419_v13, 7  ;;  %v426_v15 = vld [vmem:[%s2332_s7 + $0x28] sm:$0xff] (!%p1794_p10)  ;;  %v698_v19 = vld [vmem:[%s190_s10] sm:$0x3] (!%p1794_p10)  ;;  %v427_v25 = vld [vmem:[%s2332_s7 + $0x30] sm:$0xff] (!%p1794_p10)  ;;  %s2683_s10 = sshll.u32 (!%p1794_p10), %s819_s27, 3 }
  0x3c   : > { %v430_v39 = vld [vmem:[%s2332_s7 + $0x48] sm:$0xff] (!%p1794_p10)  ;;  %v429_v40 = vld [vmem:[%s2332_s7 + $0x40] sm:$0xff] (!%p1794_p10)  ;;  %v432_v43 = vld [vmem:[%s2332_s7 + $0x58] sm:$0xff] (!%p1794_p10)  ;;  %s822_s17 = scalar_lea.vmem (!%p1794_p10), [#allocation5], %s2683_s10  ;;  %s1827_s29 = sshll.u32 (!%p1794_p10), %s661_s26, 3 }
  0x3d   : > { %v2493_v17 = vadd.s32 (!%p1794_p10), 8, %v2488_v14  ;;  %v2496_v18 = vadd.s32 (!%p1794_p10), 16, %v2488_v14  ;;  %v2504_v20 = vadd.s32 (!%p1794_p10), 24, %v2488_v14  ;;  %v2507_v21 = vadd.s32 (!%p1794_p10), 32, %v2488_v14  ;;  %v431_v44 = vld [vmem:[%s2332_s7 + $0x50] sm:$0xff] (!%p1794_p10)  ;;  %v434_v47 = vld [vmem:[%s2332_s7 + $0x68] sm:$0xff] (!%p1794_p10) }
  0x3e   : > { %v701_v22 = vsub.s32 (!%p1794_p10), 0, %v2488_v14  ;;  %v705_v23 = vsub.s32 (!%p1794_p10), 1, %v2488_v14  ;;  %v2514_v26 = vadd.s32 (!%p1794_p10), 40, %v2488_v14  ;;  %v2517_v27 = vadd.s32 (!%p1794_p10), 48, %v2488_v14  ;;  %v433_v48 = vld [vmem:[%s2332_s7 + $0x60] sm:$0xff] (!%p1794_p10)  ;;  %v436_v1 = vld [vmem:[%s2332_s7 + $0x78] sm:$0xff] (!%p1794_p10) }
  0x3f   : > { %463 = vperm.xlu1 (!%p1794_p10), %2140, %v424_v11   ;;  %457 = vperm.xlu0 (!%p1794_p10), %2139, %v422_v12   ;;  %v2520_v28 = vadd.s32 (!%p1794_p10), 56, %v2488_v14  ;;  %v2523_v29 = vadd.s32 (!%p1794_p10), 64, %v2488_v14  ;;  %v2526_v30 = vadd.s32 (!%p1794_p10), 72, %v2488_v14  ;;  %v2529_v31 = vadd.s32 (!%p1794_p10), 80, %v2488_v14  ;;  %v435_v2 = vld [vmem:[%s2332_s7 + $0x70] sm:$0xff] (!%p1794_p10) }
  0x40   : > { %v2531_v32 = vrot.slane (!%p1794_p10), %v698_v19, %v701_v22  ;;  %v2533_v33 = vrot.slane (!%p1794_p10), %v698_v19, %v705_v23  ;;  %v2536_v34 = vadd.s32 (!%p1794_p10), 88, %v2488_v14  ;;  %v2539_v35 = vadd.s32 (!%p1794_p10), 96, %v2488_v14 }
  0x41   : > { %v2542_v36 = vadd.s32 104, %v2488_v14  ;;  %v2545_v37 = vadd.s32 112, %v2488_v14  ;;  %v2548_v38 = vadd.s32 120, %v2488_v14 }
  0x42   : > { %vm707_vm0 = vcmp.eq.s32.totalorder %v2488_v14, %v2531_v32  ;;  %vm708_vm1 = vcmp.eq.s32.totalorder %v2488_v14, %v2533_v33  ;;  %vm709_vm2 = vcmp.eq.s32.totalorder %v2493_v17, %v2531_v32  ;;  %vm710_vm3 = vcmp.eq.s32.totalorder %v2493_v17, %v2533_v33 }
  0x43   : > { %469 = vperm.xlu1 %2140, %v426_v15   ;;  %466 = vperm.xlu0 %2139, %v425_v16   ;;  %vm711_vm4 = vcmp.eq.s32.totalorder %v2496_v18, %v2531_v32  ;;  %vm712_vm5 = vcmp.eq.s32.totalorder %v2496_v18, %v2533_v33  ;;  %vm713_vm6 = vcmp.eq.s32.totalorder %v2504_v20, %v2531_v32  ;;  %v2592_v42 = vsel %vm707_vm0, 1.0, %v2250_v41 }
  0x44   : > { %vm714_vm7 = vcmp.eq.s32.totalorder %v2504_v20, %v2533_v33  ;;  %vm715_vm8 = vcmp.eq.s32.totalorder %v2507_v21, %v2531_v32  ;;  %vm716_vm9 = vcmp.eq.s32.totalorder %v2507_v21, %v2533_v33  ;;  %vm730_vm13 = vcmp.eq.s32.totalorder %v2536_v34, %v2533_v33  ;;  %v438_v20 = vld [vmem:[%s2332_s7 + $0x88] sm:$0xff]  ;;  %v437_v21 = vld [vmem:[%s2332_s7 + $0x80] sm:$0xff] }
  0x45   : > { %vm733_vm10 = vcmp.eq.s32.totalorder %v2542_v36, %v2531_v32  ;;  %vm734_vm11 = vcmp.eq.s32.totalorder %v2542_v36, %v2533_v33  ;;  %vm735_vm12 = vcmp.eq.s32.totalorder %v2545_v37, %v2531_v32  ;;  %vm736_vm0 = vcmp.eq.s32.totalorder %v2545_v37, %v2533_v33  ;;  %v439_v36 = vld [vmem:[%s2332_s7 + $0x90] sm:$0xff]  ;;  %v442_v37 = vld [vmem:[%s2332_s7 + $0xa8] sm:$0xff] }
  0x46   : > { %vm737_vm14 = vcmp.eq.s32.totalorder %v2548_v38, %v2531_v32  ;;  %vm738_vm15 = vcmp.eq.s32.totalorder %v2548_v38, %v2533_v33  ;;  %v1829_v45 = vsel %vm708_vm1, 1.0, %v2250_v41  ;;  %v1830_v46 = vsel %vm709_vm2, 1.0, %v2250_v41  ;;  %v441_v38 = vld [vmem:[%s2332_s7 + $0xa0] sm:$0xff] }
  0x47   : > { %475 = vperm.xlu1 %2140, %v428_v24   ;;  %472 = vperm.xlu0 %2139, %v427_v25   ;;  %v1831_v49 = vsel %vm710_vm3, 1.0, %v2250_v41  ;;  %v1832_v50 = vsel %vm711_vm4, 1.0, %v2250_v41  ;;  %v1833_v51 = vsel %vm712_vm5, 1.0, %v2250_v41  ;;  %v1834_v52 = vsel %vm713_vm6, 1.0, %v2250_v41 }
  0x48   : > { %v1835_v53 = vsel %vm714_vm7, 1.0, %v2250_v41  ;;  %v1836_v54 = vsel %vm715_vm8, 1.0, %v2250_v41  ;;  %v1837_v55 = vsel %vm716_vm9, 1.0, %v2250_v41  ;;  %vm3097_vm1 = vcmp.eq.s32.totalorder %v2514_v26, %v2531_v32 }
  0x49   : > { %v1838_v56 = vsel %vm3097_vm1, 1.0, %v2250_v41  ;;  %vm3098_vm2 = vcmp.eq.s32.totalorder %v2514_v26, %v2533_v33  ;;  %vm3099_vm3 = vcmp.eq.s32.totalorder %v2517_v27, %v2531_v32  ;;  %vm3100_vm4 = vcmp.eq.s32.totalorder %v2517_v27, %v2533_v33 }
  0x4a   : > { %v1839_v57 = vsel %vm3098_vm2, 1.0, %v2250_v41  ;;  %v1840_v58 = vsel %vm3099_vm3, 1.0, %v2250_v41  ;;  %v1841_v59 = vsel %vm3100_vm4, 1.0, %v2250_v41  ;;  %vm3101_vm5 = vcmp.eq.s32.totalorder %v2520_v28, %v2531_v32 }
  0x4b   : > { %481 = vperm.xlu1 %2140, %v430_v39   ;;  %478 = vperm.xlu0 %2139, %v429_v40   ;;  %v1842_v60 = vsel %vm3101_vm5, 1.0, %v2250_v41  ;;  %vm3102_vm6 = vcmp.eq.s32.totalorder %v2520_v28, %v2533_v33  ;;  %vm3103_vm7 = vcmp.eq.s32.totalorder %v2523_v29, %v2531_v32  ;;  %vm3104_vm8 = vcmp.eq.s32.totalorder %v2523_v29, %v2533_v33  ;;  %v444_v39 = vld [vmem:[%s2332_s7 + $0xb8] sm:$0xff]  ;;  %v443_v40 = vld [vmem:[%s2332_s7 + $0xb0] sm:$0xff] }
  0x4c   : > { %v1843_v61 = vsel %vm3102_vm6, 1.0, %v2250_v41  ;;  %v1844_v62 = vsel %vm3103_vm7, 1.0, %v2250_v41  ;;  %v1845_v63 = vsel %vm3104_vm8, 1.0, %v2250_v41  ;;  %vm3105_vm9 = vcmp.eq.s32.totalorder %v2526_v30, %v2531_v32 }
  0x4d   : > { %v1846_v0 = vsel %vm3105_vm9, 1.0, %v2250_v41  ;;  %vm3106_vm1 = vcmp.eq.s32.totalorder %v2526_v30, %v2533_v33  ;;  %vm3107_vm2 = vcmp.eq.s32.totalorder %v2529_v31, %v2531_v32  ;;  %vm3108_vm3 = vcmp.eq.s32.totalorder %v2529_v31, %v2533_v33 }
  0x4e   : > { %v1847_v3 = vsel %vm3106_vm1, 1.0, %v2250_v41  ;;  %v1848_v4 = vsel %vm3107_vm2, 1.0, %v2250_v41  ;;  %v1849_v5 = vsel %vm3108_vm3, 1.0, %v2250_v41  ;;  %vm3109_vm4 = vcmp.eq.s32.totalorder %v2536_v34, %v2531_v32 }
  0x4f   : > { %487 = vperm.xlu1 %2140, %v432_v43   ;;  %484 = vperm.xlu0 %2139, %v431_v44   ;;  %v1850_v6 = vsel %vm3109_vm4, 1.0, %v2250_v41  ;;  %v1851_v7 = vsel %vm730_vm13, 1.0, %v2250_v41  ;;  %vm3110_vm5 = vcmp.eq.s32.totalorder %v2539_v35, %v2531_v32  ;;  %vm3111_vm6 = vcmp.eq.s32.totalorder %v2539_v35, %v2533_v33  ;;  %v440_v35 = vld [vmem:[%s2332_s7 + $0x98] sm:$0xff]  ;;  %v445_v43 = vld [vmem:[%s2332_s7 + $0xc0] sm:$0xff] }
  0x50   : > { %v1852_v8 = vsel %vm3110_vm5, 1.0, %v2250_v41  ;;  %v1853_v9 = vsel %vm3111_vm6, 1.0, %v2250_v41  ;;  %v1854_v10 = vsel %vm733_vm10, 1.0, %v2250_v41  ;;  %v1855_v11 = vsel %vm734_vm11, 1.0, %v2250_v41  ;;  %v448_v44 = vld [vmem:[%s2332_s7 + $0xd8] sm:$0xff] }
  0x51   : > { %v1856_v12 = vsel %vm735_vm12, 1.0, %v2250_v41  ;;  %v1857_v14 = vsel %vm736_vm0, 1.0, %v2250_v41  ;;  %v1858_v15 = vsel %vm737_vm14, 1.0, %v2250_v41  ;;  %v1859_v16 = vsel %vm738_vm15, 1.0, %v2250_v41 }
  0x52   : > { %v803_v17 = vpack.c.bf16 %v1830_v46, %v2592_v42  ;;  %v804_v18 = vpack.c.bf16 %v1831_v49, %v1829_v45  ;;  %v805_v19 = vpack.c.bf16 %v1834_v52, %v1832_v50  ;;  %v806_v22 = vpack.c.bf16 %v1835_v53, %v1833_v51  ;;  %v446_v42 = vld [vmem:[%s2332_s7 + $0xc8] sm:$0xff]  ;;  %v447_v45 = vld [vmem:[%s2332_s7 + $0xd0] sm:$0xff] }
  0x53   : > { %493 = vperm.xlu1 %2140, %v434_v47   ;;  %490 = vperm.xlu0 %2139, %v433_v48   ;;  %v807_v23 = vpack.c.bf16 %v1838_v56, %v1836_v54  ;;  %v808_v24 = vpack.c.bf16 %v1839_v57, %v1837_v55  ;;  %v809_v25 = vpack.c.bf16 %v1842_v60, %v1840_v58  ;;  %v450_v46 = vld [vmem:[%s2332_s7 + $0xe8] sm:$0xff]  ;;  %v449_v47 = vld [vmem:[%s2332_s7 + $0xe0] sm:$0xff]  ;;  %v452_v48 = vld [vmem:[%s2332_s7 + $0xf8] sm:$0xff]  ;;  %v2774_v50 = vand.u32 127, %v419_v13 }
  0x54   : > { %v810_v26 = vpack.c.bf16 %v1843_v61, %v1841_v59  ;;  %v811_v27 = vpack.c.bf16 %v1846_v0, %v1844_v62  ;;  %v812_v28 = vpack.c.bf16 %v1847_v3, %v1845_v63  ;;  %v813_v29 = vpack.c.bf16 %v1850_v6, %v1848_v4  ;;  %823 = vst [vmem:[%s822_s17] sm:$0xff] %v803_v17  ;;  %v451_v49 = vld [vmem:[%s2332_s7 + $0xf0] sm:$0xff]  ;;  %s2785_s7 = scalar_lea.vmem [#allocation4], %s1827_s29 }
  0x55   : > { %824 = vst [vmem:[%s822_s17 + $0x8] sm:$0xff] %v804_v18  ;;  %825 = vst [vmem:[%s822_s17 + $0x20] sm:$0xff] %v805_v19  ;;  %v814_v30 = vpack.c.bf16 %v1851_v7, %v1849_v5  ;;  %v815_v31 = vpack.c.bf16 %v1854_v10, %v1852_v8  ;;  %v816_v32 = vpack.c.bf16 %v1855_v11, %v1853_v9 }
  0x56   : > { %v817_v33 = vpack.c.bf16 %v1858_v15, %v1856_v12  ;;  %826 = vst [vmem:[%s822_s17 + $0x28] sm:$0xff] %v806_v22  ;;  %827 = vst [vmem:[%s822_s17 + $0x40] sm:$0xff] %v807_v23  ;;  %v818_v34 = vpack.c.bf16 %v1859_v16, %v1857_v14 }
  0x57   : > { %499 = vperm.xlu1 %2140, %v436_v1   ;;  %496 = vperm.xlu0 %2139, %v435_v2   ;;  %828 = vst [vmem:[%s822_s17 + $0x48] sm:$0xff] %v808_v24  ;;  %829 = vst [vmem:[%s822_s17 + $0x60] sm:$0xff] %v809_v25 }
  0x58   : > { %830 = vst [vmem:[%s822_s17 + $0x68] sm:$0xff] %v810_v26  ;;  %831 = vst [vmem:[%s822_s17 + $0x80] sm:$0xff] %v811_v27 }
  0x59   : > { %832 = vst [vmem:[%s822_s17 + $0x88] sm:$0xff] %v812_v28  ;;  %833 = vst [vmem:[%s822_s17 + $0xa0] sm:$0xff] %v813_v29 }
  0x5a   : > { %834 = vst [vmem:[%s822_s17 + $0xa8] sm:$0xff] %v814_v30  ;;  %835 = vst [vmem:[%s822_s17 + $0xc0] sm:$0xff] %v815_v31 }
  0x5b   : > { %505 = vperm.xlu1 %2140, %v438_v20   ;;  %502 = vperm.xlu0 %2139, %v437_v21   ;;  %836 = vst [vmem:[%s822_s17 + $0xc8] sm:$0xff] %v816_v32  ;;  %837 = vst [vmem:[%s822_s17 + $0xe0] sm:$0xff] %v817_v33 }
  0x5c   : > { %838 = vst [vmem:[%s822_s17 + $0xe8] sm:$0xff] %v818_v34 }
  0x5f   : > { %511 = vperm.xlu1 %2140, %v440_v35   ;;  %508 = vperm.xlu0 %2139, %v439_v36  }
  0x63   : > { %517 = vperm.xlu1 %2140, %v442_v37   ;;  %514 = vperm.xlu0 %2139, %v441_v38  }
  0x67   : > { %523 = vperm.xlu1 %2140, %v444_v39   ;;  %520 = vperm.xlu0 %2139, %v443_v40  }
  0x6b   : > { %529 = vperm.xlu1 %2140, %v446_v42   ;;  %526 = vperm.xlu0 %2139, %v445_v43  }
  0x6f   : > { %535 = vperm.xlu1 %2140, %v448_v44   ;;  %532 = vperm.xlu0 %2139, %v447_v45  }
  0x73   : > { %541 = vperm.xlu1 %2140, %v450_v46   ;;  %538 = vperm.xlu0 %2139, %v449_v47  }
  0x77   : > { %547 = vperm.xlu1 %2140, %v452_v48   ;;  %544 = vperm.xlu0 %2139, %v451_v49  }
  0xba   : > { %v461_v51 = vpop.permute.xlu1 %460  ;;  %v455_v52 = vpop.permute.xlu0 %454 }
  0xbb   : > { %vm551_vm10 = vcmp.eq.s32.totalorder %v2774_v50, %v461_v51  ;;  %vm549_vm11 = vcmp.eq.s32.totalorder %v2774_v50, %v455_v52 }
  0xbc   : > { %v1797_v55 = vsel %vm551_vm10, 1.0, %v2250_v41  ;;  %v1795_v56 = vsel %vm549_vm11, 1.0, %v2250_v41 }
  0xbe   : > { %v464_v53 = vpop.permute.xlu1 %463  ;;  %v458_v54 = vpop.permute.xlu0 %457 }
  0xbf   : > { %vm552_vm12 = vcmp.eq.s32.totalorder %v2774_v50, %v464_v53  ;;  %vm550_vm13 = vcmp.eq.s32.totalorder %v2774_v50, %v458_v54 }
  0xc0   : > { %v1798_v13 = vsel %vm552_vm12, 1.0, %v2250_v41  ;;  %v1796_v57 = vsel %vm550_vm13, 1.0, %v2250_v41 }
  0xc1   : > { %v646_v58 = vpack.c.bf16 %v1798_v13, %v1797_v55  ;;  %v645_v59 = vpack.c.bf16 %v1796_v57, %v1795_v56 }
  0xc2   : > { %v470_v60 = vpop.permute.xlu1 %469  ;;  %v467_v61 = vpop.permute.xlu0 %466 }
  0xc3   : > { %666 = vst [vmem:[%s2785_s7 + $0x8] sm:$0xff] %v646_v58  ;;  %665 = vst [vmem:[%s2785_s7] sm:$0xff] %v645_v59  ;;  %vm554_vm14 = vcmp.eq.s32.totalorder %v2774_v50, %v470_v60  ;;  %vm553_vm15 = vcmp.eq.s32.totalorder %v2774_v50, %v467_v61 }
  0xc4   : > { %v1800_v62 = vsel %vm554_vm14, 1.0, %v2250_v41  ;;  %v1799_v63 = vsel %vm553_vm15, 1.0, %v2250_v41 }
  0xc5   : > { %v647_v0 = vpack.c.bf16 %v1800_v62, %v1799_v63 }
  0xc6   : > { %v476_v1 = vpop.permute.xlu1 %475  ;;  %v473_v2 = vpop.permute.xlu0 %472 }
  0xc7   : > { %667 = vst [vmem:[%s2785_s7 + $0x10] sm:$0xff] %v647_v0  ;;  %vm556_vm0 = vcmp.eq.s32.totalorder %v2774_v50, %v476_v1  ;;  %vm555_vm7 = vcmp.eq.s32.totalorder %v2774_v50, %v473_v2 }
  0xc8   : > { %v1802_v3 = vsel %vm556_vm0, 1.0, %v2250_v41  ;;  %v1801_v4 = vsel %vm555_vm7, 1.0, %v2250_v41 }
  0xc9   : > { %v648_v5 = vpack.c.bf16 %v1802_v3, %v1801_v4 }
  0xca   : > { %v482_v6 = vpop.permute.xlu1 %481  ;;  %v479_v7 = vpop.permute.xlu0 %478 }
  0xcb   : > { %668 = vst [vmem:[%s2785_s7 + $0x18] sm:$0xff] %v648_v5  ;;  %vm558_vm8 = vcmp.eq.s32.totalorder %v2774_v50, %v482_v6  ;;  %vm557_vm9 = vcmp.eq.s32.totalorder %v2774_v50, %v479_v7 }
  0xcc   : > { %v1804_v8 = vsel %vm558_vm8, 1.0, %v2250_v41  ;;  %v1803_v9 = vsel %vm557_vm9, 1.0, %v2250_v41 }
  0xcd   : > { %v649_v10 = vpack.c.bf16 %v1804_v8, %v1803_v9 }
  0xce   : > { %v488_v11 = vpop.permute.xlu1 %487  ;;  %v485_v12 = vpop.permute.xlu0 %484 }
  0xcf   : > { %669 = vst [vmem:[%s2785_s7 + $0x20] sm:$0xff] %v649_v10  ;;  %vm560_vm1 = vcmp.eq.s32.totalorder %v2774_v50, %v488_v11  ;;  %vm559_vm2 = vcmp.eq.s32.totalorder %v2774_v50, %v485_v12 }
  0xd0   : > { %v1806_v14 = vsel %vm560_vm1, 1.0, %v2250_v41  ;;  %v1805_v15 = vsel %vm559_vm2, 1.0, %v2250_v41 }
  0xd1   : > { %v650_v16 = vpack.c.bf16 %v1806_v14, %v1805_v15 }
  0xd2   : > { %v494_v17 = vpop.permute.xlu1 %493  ;;  %v491_v18 = vpop.permute.xlu0 %490 }
  0xd3   : > { %670 = vst [vmem:[%s2785_s7 + $0x28] sm:$0xff] %v650_v16  ;;  %vm562_vm3 = vcmp.eq.s32.totalorder %v2774_v50, %v494_v17  ;;  %vm561_vm4 = vcmp.eq.s32.totalorder %v2774_v50, %v491_v18 }
  0xd4   : > { %v1808_v19 = vsel %vm562_vm3, 1.0, %v2250_v41  ;;  %v1807_v20 = vsel %vm561_vm4, 1.0, %v2250_v41 }
  0xd5   : > { %v651_v21 = vpack.c.bf16 %v1808_v19, %v1807_v20 }
  0xd6   : > { %v500_v22 = vpop.permute.xlu1 %499  ;;  %v497_v23 = vpop.permute.xlu0 %496 }
  0xd7   : > { %671 = vst [vmem:[%s2785_s7 + $0x30] sm:$0xff] %v651_v21  ;;  %vm564_vm5 = vcmp.eq.s32.totalorder %v2774_v50, %v500_v22  ;;  %vm563_vm6 = vcmp.eq.s32.totalorder %v2774_v50, %v497_v23 }
  0xd8   : > { %v1810_v24 = vsel %vm564_vm5, 1.0, %v2250_v41  ;;  %v1809_v25 = vsel %vm563_vm6, 1.0, %v2250_v41 }
  0xd9   : > { %v652_v26 = vpack.c.bf16 %v1810_v24, %v1809_v25 }
  0xda   : > { %v506_v27 = vpop.permute.xlu1 %505  ;;  %v503_v28 = vpop.permute.xlu0 %502 }
  0xdb   : > { %672 = vst [vmem:[%s2785_s7 + $0x38] sm:$0xff] %v652_v26  ;;  %vm566_vm10 = vcmp.eq.s32.totalorder %v2774_v50, %v506_v27  ;;  %vm565_vm11 = vcmp.eq.s32.totalorder %v2774_v50, %v503_v28 }
  0xdc   : > { %v1812_v29 = vsel %vm566_vm10, 1.0, %v2250_v41  ;;  %v1811_v30 = vsel %vm565_vm11, 1.0, %v2250_v41 }
  0xdd   : > { %v653_v31 = vpack.c.bf16 %v1812_v29, %v1811_v30 }
  0xde   : > { %v512_v32 = vpop.permute.xlu1 %511  ;;  %v509_v33 = vpop.permute.xlu0 %508 }
  0xdf   : > { %673 = vst [vmem:[%s2785_s7 + $0x40] sm:$0xff] %v653_v31  ;;  %vm568_vm12 = vcmp.eq.s32.totalorder %v2774_v50, %v512_v32  ;;  %vm567_vm13 = vcmp.eq.s32.totalorder %v2774_v50, %v509_v33 }
  0xe0   : > { %v1814_v34 = vsel %vm568_vm12, 1.0, %v2250_v41  ;;  %v1813_v35 = vsel %vm567_vm13, 1.0, %v2250_v41 }
  0xe1   : > { %v654_v36 = vpack.c.bf16 %v1814_v34, %v1813_v35 }
  0xe2   : > { %v518_v37 = vpop.permute.xlu1 %517  ;;  %v515_v38 = vpop.permute.xlu0 %514 }
  0xe3   : > { %674 = vst [vmem:[%s2785_s7 + $0x48] sm:$0xff] %v654_v36  ;;  %vm570_vm14 = vcmp.eq.s32.totalorder %v2774_v50, %v518_v37  ;;  %vm569_vm15 = vcmp.eq.s32.totalorder %v2774_v50, %v515_v38 }
  0xe4   : > { %v1816_v39 = vsel %vm570_vm14, 1.0, %v2250_v41  ;;  %v1815_v40 = vsel %vm569_vm15, 1.0, %v2250_v41 }
  0xe5   : > { %v655_v42 = vpack.c.bf16 %v1816_v39, %v1815_v40 }
  0xe6   : > { %v524_v43 = vpop.permute.xlu1 %523  ;;  %v521_v44 = vpop.permute.xlu0 %520 }
  0xe7   : > { %675 = vst [vmem:[%s2785_s7 + $0x50] sm:$0xff] %v655_v42  ;;  %vm572_vm0 = vcmp.eq.s32.totalorder %v2774_v50, %v524_v43  ;;  %vm571_vm7 = vcmp.eq.s32.totalorder %v2774_v50, %v521_v44 }
  0xe8   : > { %v1818_v45 = vsel %vm572_vm0, 1.0, %v2250_v41  ;;  %v1817_v46 = vsel %vm571_vm7, 1.0, %v2250_v41 }
  0xe9   : > { %v656_v47 = vpack.c.bf16 %v1818_v45, %v1817_v46 }
  0xea   : > { %v530_v48 = vpop.permute.xlu1 %529  ;;  %v527_v49 = vpop.permute.xlu0 %526 }
  0xeb   : > { %676 = vst [vmem:[%s2785_s7 + $0x58] sm:$0xff] %v656_v47  ;;  %vm574_vm8 = vcmp.eq.s32.totalorder %v2774_v50, %v530_v48  ;;  %vm573_vm9 = vcmp.eq.s32.totalorder %v2774_v50, %v527_v49 }
  0xec   : > { %v1820_v51 = vsel %vm574_vm8, 1.0, %v2250_v41  ;;  %v1819_v52 = vsel %vm573_vm9, 1.0, %v2250_v41 }
  0xed   : > { %v657_v53 = vpack.c.bf16 %v1820_v51, %v1819_v52 }
  0xee   : > { %v536_v54 = vpop.permute.xlu1 %535  ;;  %v533_v55 = vpop.permute.xlu0 %532 }
  0xef   : > { %677 = vst [vmem:[%s2785_s7 + $0x60] sm:$0xff] %v657_v53  ;;  %vm576_vm1 = vcmp.eq.s32.totalorder %v2774_v50, %v536_v54  ;;  %vm575_vm2 = vcmp.eq.s32.totalorder %v2774_v50, %v533_v55 }
  0xf0   : > { %v1822_v56 = vsel %vm576_vm1, 1.0, %v2250_v41  ;;  %v1821_v13 = vsel %vm575_vm2, 1.0, %v2250_v41 }
  0xf1   : > { %v658_v57 = vpack.c.bf16 %v1822_v56, %v1821_v13 }
  0xf2   : > { %v542_v58 = vpop.permute.xlu1 %541  ;;  %v539_v59 = vpop.permute.xlu0 %538 }
  0xf3   : > { %678 = vst [vmem:[%s2785_s7 + $0x68] sm:$0xff] %v658_v57  ;;  %vm578_vm3 = vcmp.eq.s32.totalorder %v2774_v50, %v542_v58  ;;  %vm577_vm4 = vcmp.eq.s32.totalorder %v2774_v50, %v539_v59 }
  0xf4   : > { %v1824_v60 = vsel %vm578_vm3, 1.0, %v2250_v41  ;;  %v1823_v61 = vsel %vm577_vm4, 1.0, %v2250_v41 }
  0xf5   : > { %v659_v62 = vpack.c.bf16 %v1824_v60, %v1823_v61 }
  0xf6   : > { %v548_v63 = vpop.permute.xlu1 %547  ;;  %v545_v0 = vpop.permute.xlu0 %544 }
  0xf7   : > { %679 = vst [vmem:[%s2785_s7 + $0x70] sm:$0xff] %v659_v62  ;;  %vm580_vm5 = vcmp.eq.s32.totalorder %v2774_v50, %v548_v63  ;;  %vm579_vm6 = vcmp.eq.s32.totalorder %v2774_v50, %v545_v0 }
  0xf8   : > { %v1826_v1 = vsel %vm580_vm5, 1.0, %v2250_v41  ;;  %v1825_v2 = vsel %vm579_vm6, 1.0, %v2250_v41 }
  0xf9   : > { %v660_v3 = vpack.c.bf16 %v1826_v1, %v1825_v2 }
  0xfb   : > { %680 = vst [vmem:[%s2785_s7 + $0x78] sm:$0xff] %v660_v3 }
  0xfc PF: > { %v859_v4 = vld [vmem:[#allocation2] sm:$0xff]  ;;  %v860_v5 = vld [vmem:[#allocation2 + $0x8] sm:$0xff]  ;;  %s839_s30 = sshra.s32 %s2323_s28, 4  ;;  %v861_v6 = vld [vmem:[#allocation2 + $0x10] sm:$0xff]  ;;  %p1864_p11 = scmp.ne.s32.totalorder %s2231_s18, 1 }
  0xfd   : > { %2023 = vmatprep.subr.bf16.mxu0 %v859_v4  ;;  %2071 = vmatprep.subr.bf16.mxu1 %v859_v4  ;;  %s2860_s6 = sshll.u32 %s839_s30, 3  ;;  %v862_v7 = vld [vmem:[#allocation2 + $0x18] sm:$0xff]  ;;  %v863_v8 = vld [vmem:[#allocation2 + $0x20] sm:$0xff]  ;;  %v864_v9 = vld [vmem:[#allocation2 + $0x28] sm:$0xff] }
  0xfe   : > { %2024 = vmatpush3.bf16.msra.mxu0 %v859_v4  ;;  %2079 = vmatpush3.bf16.msra.mxu1 %v859_v4  ;;  %s2863_s8 = scalar_lea.vmem [#allocation4], %s2860_s6  ;;  %v865_v10 = vld [vmem:[#allocation2 + $0x30] sm:$0xff]  ;;  %v866_v11 = vld [vmem:[#allocation2 + $0x38] sm:$0xff]  ;;  %s2882_s28 = scalar_lea.vmem [#allocation6], %s2860_s6 }
  0xff   : > { %2025 = vmatprep.subr.bf16.mxu0 %v860_v5  ;;  %2072 = vmatprep.subr.bf16.mxu1 %v860_v5  ;;  %v1031_v27 = vld [vmem:[%s2882_s28 + $0x8] sm:$0xff]  ;;  %v1030_v29 = vld [vmem:[%s2882_s28] sm:$0xff]  ;;  %v1033_v13 = vld [vmem:[%s2882_s28 + $0x18] sm:$0xff]  ;;  %s2893_s9 = scalar_lea.vmem [#allocation3], %s2860_s6 }
 0x100   : > { %v1039_v28 = vld [vmem:[%s2882_s28 + $0x48] sm:$0xff]  ;;  %v1038_v30 = vld [vmem:[%s2882_s28 + $0x40] sm:$0xff]  ;;  %v1048_v31 = vunpack.c.l.bf16 %v1031_v27  ;;  %v1049_v33 = vunpack.c.h.bf16 %v1031_v27  ;;  %v1046_v37 = vunpack.c.l.bf16 %v1030_v29  ;;  %v1047_v39 = vunpack.c.h.bf16 %v1030_v29  ;;  %v1041_v57 = vld [vmem:[%s2882_s28 + $0x58] sm:$0xff] }
 0x101   : > { %v1064_v32 = vunpack.c.l.bf16 %v1039_v28  ;;  %v1065_v34 = vunpack.c.h.bf16 %v1039_v28  ;;  %v1062_v38 = vunpack.c.l.bf16 %v1038_v30  ;;  %v1063_v40 = vunpack.c.h.bf16 %v1038_v30  ;;  %v1032_v60 = vld [vmem:[%s2882_s28 + $0x10] sm:$0xff]  ;;  %v1034_v27 = vld [vmem:[%s2882_s28 + $0x20] sm:$0xff] }
 0x102   : > { %v843_v41 = vld [vmem:[%s2863_s8] sm:$0xff]  ;;  %2026 = vmatpush3.bf16.msra.mxu0 %v860_v5  ;;  %2080 = vmatpush3.bf16.msra.mxu1 %v860_v5  ;;  %v844_v12 = vld [vmem:[%s2863_s8 + $0x8] sm:$0xff]  ;;  %v845_v15 = vld [vmem:[%s2863_s8 + $0x10] sm:$0xff]  ;;  %v1052_v0 = vunpack.c.l.bf16 %v1033_v13  ;;  %v1068_v1 = vunpack.c.l.bf16 %v1041_v57  ;;  %v1053_v2 = vunpack.c.h.bf16 %v1033_v13  ;;  %v1069_v3 = vunpack.c.h.bf16 %v1041_v57 }
 0x103   : > { %v851_v50 = vld [vmem:[%s2863_s8 + $0x40] sm:$0xff]  ;;  %2039 = vmatprep.mubr.bf16.mxu0 %v843_v41  ;;  %2027 = vmatprep.subr.bf16.mxu0 %v861_v6  ;;  %v852_v14 = vld [vmem:[%s2863_s8 + $0x48] sm:$0xff]  ;;  %v853_v16 = vld [vmem:[%s2863_s8 + $0x50] sm:$0xff]  ;;  %v1050_v41 = vunpack.c.l.bf16 %v1032_v60 }
 0x104   : > { %2055 = vmatprep.mubr.bf16.mxu1 %v851_v50  ;;  %2073 = vmatprep.subr.bf16.mxu1 %v861_v6  ;;  %v846_v17 = vld [vmem:[%s2863_s8 + $0x18] sm:$0xff]  ;;  %v847_v19 = vld [vmem:[%s2863_s8 + $0x20] sm:$0xff]  ;;  %v848_v21 = vld [vmem:[%s2863_s8 + $0x28] sm:$0xff] }
 0x105   : > { %v854_v18 = vld [vmem:[%s2863_s8 + $0x58] sm:$0xff]  ;;  %v855_v20 = vld [vmem:[%s2863_s8 + $0x60] sm:$0xff]  ;;  %v856_v22 = vld [vmem:[%s2863_s8 + $0x68] sm:$0xff] }
 0x106   : > { %2028 = vmatpush3.bf16.msra.mxu0 %v861_v6  ;;  %2081 = vmatpush3.bf16.msra.mxu1 %v861_v6  ;;  %v849_v23 = vld [vmem:[%s2863_s8 + $0x30] sm:$0xff]  ;;  %v850_v25 = vld [vmem:[%s2863_s8 + $0x38] sm:$0xff]  ;;  %v1051_v6 = vunpack.c.h.bf16 %v1032_v60  ;;  %v1042_v28 = vld [vmem:[%s2882_s28 + $0x60] sm:$0xff] }
 0x107   : > { %2029 = vmatprep.subr.bf16.mxu0 %v862_v7  ;;  %2074 = vmatprep.subr.bf16.mxu1 %v862_v7  ;;  %v857_v24 = vld [vmem:[%s2863_s8 + $0x70] sm:$0xff]  ;;  %v858_v26 = vld [vmem:[%s2863_s8 + $0x78] sm:$0xff] }
 0x108   : > { %v1040_v61 = vld [vmem:[%s2882_s28 + $0x50] sm:$0xff]  ;;  %v1037_v13 = vld [vmem:[%s2882_s28 + $0x38] sm:$0xff] }
 0x109   : > { %v1066_v50 = vunpack.c.l.bf16 %v1040_v61  ;;  %v1045_v57 = vld [vmem:[%s2882_s28 + $0x78] sm:$0xff]  ;;  %v1036_v60 = vld [vmem:[%s2882_s28 + $0x30] sm:$0xff] }
 0x10a   : > { %2030 = vmatpush3.bf16.msra.mxu0 %v862_v7  ;;  %2082 = vmatpush3.bf16.msra.mxu1 %v862_v7  ;;  %v1067_v7 = vunpack.c.h.bf16 %v1040_v61  ;;  %v1044_v61 = vld [vmem:[%s2882_s28 + $0x70] sm:$0xff] }
 0x10b   : > { %2031 = vmatprep.subr.bf16.mxu0 %v863_v8  ;;  %2075 = vmatprep.subr.bf16.mxu1 %v863_v8 }
 0x10e   : > { %2032 = vmatpush3.bf16.msra.mxu0 %v863_v8  ;;  %2083 = vmatpush3.bf16.msra.mxu1 %v863_v8 }
 0x10f   : > { %2033 = vmatprep.subr.bf16.mxu0 %v864_v9  ;;  %2076 = vmatprep.subr.bf16.mxu1 %v864_v9 }
 0x112   : > { %2034 = vmatpush3.bf16.msra.mxu0 %v864_v9  ;;  %2084 = vmatpush3.bf16.msra.mxu1 %v864_v9 }
 0x113   : > { %2035 = vmatprep.subr.bf16.mxu0 %v865_v10  ;;  %2077 = vmatprep.subr.bf16.mxu1 %v865_v10 }
 0x116   : > { %2036 = vmatpush3.bf16.msra.mxu0 %v865_v10  ;;  %2085 = vmatpush3.bf16.msra.mxu1 %v865_v10 }
 0x117   : > { %2037 = vmatprep.subr.bf16.mxu0 %v866_v11  ;;  %2078 = vmatprep.subr.bf16.mxu1 %v866_v11 }
 0x11a   : > { %2038 = vmatpush3.bf16.msra.mxu0 %v866_v11  ;;  %2086 = vmatpush3.bf16.msra.mxu1 %v866_v11 }
 0x11d   : > { %2040 = vmatmul.mubr.bf16.vlgmr.msra.gmra.mrb[0].mxu0 %v844_v12  ;;  %2056 = vmatmul.mubr.bf16.vlgmr.msra.gmra.mrb[0].mxu1 %v852_v14 }
 0x11e   : > { %2043 = vmatprep.mubr.bf16.mxu0 %v845_v15  ;;  %2059 = vmatprep.mubr.bf16.mxu1 %v853_v16 }
 0x125   : > { %2044 = vmatmul.mubr.bf16.gmra.mrb[4].mxu0 %v846_v17  ;;  %2060 = vmatmul.mubr.bf16.gmra.mrb[4].mxu1 %v854_v18 }
 0x126   : > { %2047 = vmatprep.mubr.bf16.mxu0 %v847_v19  ;;  %2063 = vmatprep.mubr.bf16.mxu1 %v855_v20 }
 0x12d   : > { %2048 = vmatmul.mubr.bf16.gmra.mrb[8].mxu0 %v848_v21  ;;  %2064 = vmatmul.mubr.bf16.gmra.mrb[8].mxu1 %v856_v22 }
 0x12e   : > { %2051 = vmatprep.mubr.bf16.mxu0 %v849_v23  ;;  %2067 = vmatprep.mubr.bf16.mxu1 %v857_v24  ;;  %v1035_v23 = vld [vmem:[%s2882_s28 + $0x28] sm:$0xff] }
 0x12f   : > { %v1043_v24 = vld [vmem:[%s2882_s28 + $0x68] sm:$0xff] }
 0x135   : > { %2052 = vmatmul.mubr.bf16.gmra.mrb[12].mxu0 %v850_v25  ;;  %2068 = vmatmul.mubr.bf16.gmra.mrb[12].mxu1 %v858_v26 }
 0x1f0   : > { %v2041_v35 = vpop.f32.mrb[0].mxu0  ;;  %v2057_v36 = vpop.f32.mrb[0].mxu1 }
 0x1f1   : > { %v901_v42 = vpop.f32.mrb[1].mxu0  ;;  %v965_v43 = vpop.f32.mrb[1].mxu1  ;;  %v1080_v46 = vmul.f32 %v2041_v35, %v1048_v31  ;;  %v1096_v47 = vmul.f32 %v2057_v36, %v1064_v32  ;;  %v1056_v31 = vunpack.c.l.bf16 %v1035_v23  ;;  %v1072_v32 = vunpack.c.l.bf16 %v1043_v24 }
 0x1f2   : > { %v2042_v44 = vpop.f32.mrb[2].mxu0  ;;  %v2058_v45 = vpop.f32.mrb[2].mxu1  ;;  %v1078_v53 = vmul.f32 %v1046_v37, %v901_v42  ;;  %v1094_v54 = vmul.f32 %v1062_v38, %v965_v43  ;;  %v1054_v37 = vunpack.c.l.bf16 %v1034_v27  ;;  %v1070_v38 = vunpack.c.l.bf16 %v1042_v28 }
 0x1f3   : > { %v1081_v48 = vmul.f32 %v2042_v44, %v1049_v33  ;;  %v1097_v49 = vmul.f32 %v2058_v45, %v1065_v34  ;;  %v904_v51 = vpop.f32.mrb[3].mxu0  ;;  %v968_v52 = vpop.f32.mrb[3].mxu1  ;;  %v1057_v33 = vunpack.c.h.bf16 %v1035_v23  ;;  %v1073_v34 = vunpack.c.h.bf16 %v1043_v24 }
 0x1f4   : > { %v1079_v55 = vmul.f32 %v1047_v39, %v904_v51  ;;  %v1095_v56 = vmul.f32 %v1063_v40, %v968_v52  ;;  %v1055_v39 = vunpack.c.h.bf16 %v1034_v27  ;;  %v1071_v40 = vunpack.c.h.bf16 %v1042_v28 }
 0x1f5   : > { %v1111_v58 = vpack.c.bf16 %v1081_v48, %v1080_v46  ;;  %v1119_v59 = vpack.c.bf16 %v1097_v49, %v1096_v47 }
 0x1f6   : > { %v1110_v62 = vpack.c.bf16 %v1079_v55, %v1078_v53  ;;  %v1118_v63 = vpack.c.bf16 %v1095_v56, %v1094_v54 }
 0x1f7   : > { %1129 = vst [vmem:[%s2893_s9 + $0x8] sm:$0xff] %v1111_v58  ;;  %1137 = vst [vmem:[%s2893_s9 + $0x48] sm:$0xff] %v1119_v59 }
 0x1f8   : > { %1128 = vst [vmem:[%s2893_s9] sm:$0xff] %v1110_v62  ;;  %1136 = vst [vmem:[%s2893_s9 + $0x40] sm:$0xff] %v1118_v63  ;;  %v2045_v4 = vpop.f32.mrb[4].mxu0  ;;  %v2061_v5 = vpop.f32.mrb[4].mxu1 }
 0x1f9   : > { %v917_v8 = vpop.f32.mrb[5].mxu0  ;;  %v981_v9 = vpop.f32.mrb[5].mxu1  ;;  %v1084_v12 = vmul.f32 %v2045_v4, %v1052_v0  ;;  %v1100_v14 = vmul.f32 %v2061_v5, %v1068_v1  ;;  %v1060_v0 = vunpack.c.l.bf16 %v1037_v13  ;;  %v1076_v1 = vunpack.c.l.bf16 %v1045_v57 }
 0x1fa   : > { %v2046_v10 = vpop.f32.mrb[6].mxu0  ;;  %v2062_v11 = vpop.f32.mrb[6].mxu1  ;;  %v1082_v19 = vmul.f32 %v1050_v41, %v917_v8  ;;  %v1098_v20 = vmul.f32 %v1066_v50, %v981_v9  ;;  %v1058_v41 = vunpack.c.l.bf16 %v1036_v60  ;;  %v1074_v50 = vunpack.c.l.bf16 %v1044_v61 }
 0x1fb   : > { %v1085_v15 = vmul.f32 %v2046_v10, %v1053_v2  ;;  %v1101_v16 = vmul.f32 %v2062_v11, %v1069_v3  ;;  %v920_v17 = vpop.f32.mrb[7].mxu0  ;;  %v984_v18 = vpop.f32.mrb[7].mxu1  ;;  %v1061_v2 = vunpack.c.h.bf16 %v1037_v13  ;;  %v1077_v3 = vunpack.c.h.bf16 %v1045_v57  ;;  %v1406_v57 = vld [vmem:[%s3093_s2] sm:$0xff] (!%p1864_p11) }
 0x1fc   : > { %v1083_v21 = vmul.f32 %v1051_v6, %v920_v17  ;;  %v1099_v22 = vmul.f32 %v1067_v7, %v984_v18  ;;  %v1059_v6 = vunpack.c.h.bf16 %v1036_v60  ;;  %v1075_v7 = vunpack.c.h.bf16 %v1044_v61 }
 0x1fd   : > { %v1113_v25 = vpack.c.bf16 %v1085_v15, %v1084_v12  ;;  %v1121_v26 = vpack.c.bf16 %v1101_v16, %v1100_v14 }
 0x1fe   : > { %v1112_v29 = vpack.c.bf16 %v1083_v21, %v1082_v19  ;;  %v1120_v30 = vpack.c.bf16 %v1099_v22, %v1098_v20 }
 0x1ff   : > { %1131 = vst [vmem:[%s2893_s9 + $0x18] sm:$0xff] %v1113_v25  ;;  %1139 = vst [vmem:[%s2893_s9 + $0x58] sm:$0xff] %v1121_v26 }
 0x200   : > { %1130 = vst [vmem:[%s2893_s9 + $0x10] sm:$0xff] %v1112_v29  ;;  %1138 = vst [vmem:[%s2893_s9 + $0x50] sm:$0xff] %v1120_v30  ;;  %v2049_v35 = vpop.f32.mrb[8].mxu0  ;;  %v2065_v36 = vpop.f32.mrb[8].mxu1 }
 0x201   : > { %v933_v42 = vpop.f32.mrb[9].mxu0  ;;  %v997_v43 = vpop.f32.mrb[9].mxu1  ;;  %v1088_v46 = vmul.f32 %v2049_v35, %v1056_v31  ;;  %v1104_v47 = vmul.f32 %v2065_v36, %v1072_v32 }
 0x202   : > { %v2050_v44 = vpop.f32.mrb[10].mxu0  ;;  %v2066_v45 = vpop.f32.mrb[10].mxu1  ;;  %v1086_v53 = vmul.f32 %v1054_v37, %v933_v42  ;;  %v1102_v54 = vmul.f32 %v1070_v38, %v997_v43  ;;  %v2251_v37 = vmov (!%p1864_p11), 0   ;;  %v1149_v43 = vld [vmem:[#allocation5 + $0x8] sm:$0xff] (!%p1864_p11) }
 0x203   : > { %v1089_v48 = vmul.f32 %v2050_v44, %v1057_v33  ;;  %v1105_v49 = vmul.f32 %v2066_v45, %v1073_v34  ;;  %v936_v51 = vpop.f32.mrb[11].mxu0  ;;  %v1000_v52 = vpop.f32.mrb[11].mxu1  ;;  %2141 = vset.pattern.permute.xlu0 (!%p1864_p11), %v2251_v37  ;;  %2142 = vset.pattern.permute.xlu1 (!%p1864_p11), %v2251_v37  ;;  %v1175_v37 = vld [vmem:[#allocation5 + $0xd8] sm:$0xff] (!%p1864_p11) }
 0x204   : > { %v1087_v55 = vmul.f32 %v1055_v39, %v936_v51  ;;  %v1103_v56 = vmul.f32 %v1071_v40, %v1000_v52  ;;  %1244 = vmatprep.mubr.bf16.mxu0 (!%p1864_p11), %v1149_v43  ;;  %1424 = vperm.xlu0 (!%p1864_p11), %2141, %v1406_v57   ;;  %v1176_v43 = vld [vmem:[#allocation5 + $0xe0] sm:$0xff] (!%p1864_p11) }
 0x205   : > { %v1115_v58 = vpack.c.bf16 %v1089_v48, %v1088_v46  ;;  %v1123_v59 = vpack.c.bf16 %v1105_v49, %v1104_v47  ;;  %v1151_v46 = vld [vmem:[#allocation5 + $0x18] sm:$0xff] (!%p1864_p11) }
 0x206   : > { %v1114_v62 = vpack.c.bf16 %v1087_v55, %v1086_v53  ;;  %v1122_v63 = vpack.c.bf16 %v1103_v56, %v1102_v54  ;;  %1341 = vmatprep.mubr.bf16.mxu1 (!%p1864_p11), %v1151_v46 }
 0x207   : > { %1133 = vst [vmem:[%s2893_s9 + $0x28] sm:$0xff] %v1115_v58  ;;  %1141 = vst [vmem:[%s2893_s9 + $0x68] sm:$0xff] %v1123_v59  ;;  %v1408_v58 = vld [vmem:[%s3093_s2 + $0x10] sm:$0xff] (!%p1864_p11) }
 0x208   : > { %1132 = vst [vmem:[%s2893_s9 + $0x20] sm:$0xff] %v1114_v62  ;;  %1140 = vst [vmem:[%s2893_s9 + $0x60] sm:$0xff] %v1122_v63  ;;  %v2053_v4 = vpop.f32.mrb[12].mxu0  ;;  %v2069_v5 = vpop.f32.mrb[12].mxu1  ;;  %1434 = vperm.xlu1 (!%p1864_p11), %2142, %v1408_v58   ;;  %v1407_v63 = vld [vmem:[%s3093_s2 + $0x8] sm:$0xff] (!%p1864_p11) }
 0x209   : > { %v949_v8 = vpop.f32.mrb[13].mxu0  ;;  %v1013_v9 = vpop.f32.mrb[13].mxu1  ;;  %v1092_v12 = vmul.f32 %v2053_v4, %v1060_v0  ;;  %v1108_v14 = vmul.f32 %v2069_v5, %v1076_v1  ;;  %v1409_v0 = vld [vmem:[%s3093_s2 + $0x18] sm:$0xff] (!%p1864_p11)  ;;  %1429 = vperm.xlu0 (!%p1864_p11), %2141, %v1407_v63   ;;  %v1411_v4 = vld [vmem:[%s3093_s2 + $0x28] sm:$0xff] (!%p1864_p11)  ;;  %v1148_v5 = vld [vmem:[#allocation5] sm:$0xff] (!%p1864_p11) }
 0x20a   : > { %v2054_v10 = vpop.f32.mrb[14].mxu0  ;;  %v2070_v11 = vpop.f32.mrb[14].mxu1  ;;  %v1090_v19 = vmul.f32 %v1058_v41, %v949_v8  ;;  %v1106_v20 = vmul.f32 %v1074_v50, %v1013_v9  ;;  %1147 = sbr.rel (%p1864_p11) target bundleno = 1009 (0x3f1), region = 112  ;;  %v1150_v41 = vld [vmem:[#allocation5 + $0x10] sm:$0xff] (!%p1864_p11)  ;;  %v1153_v50 = vld [vmem:[#allocation5 + $0x28] sm:$0xff] (!%p1864_p11)  ;;  %v1413_v8 = vld [vmem:[%s3093_s2 + $0x38] sm:$0xff] (!%p1864_p11) }
 0x20b   : > { %v1093_v15 = vmul.f32 %v2054_v10, %v1061_v2  ;;  %v1109_v16 = vmul.f32 %v2070_v11, %v1077_v3  ;;  %v952_v17 = vpop.f32.mrb[15].mxu0  ;;  %v1016_v18 = vpop.f32.mrb[15].mxu1  ;;  %v1410_v3 = vld [vmem:[%s3093_s2 + $0x20] sm:$0xff] (!%p1864_p11)  ;;  %v1415_v10 = vld [vmem:[%s3093_s2 + $0x48] sm:$0xff] (!%p1864_p11) }
 0x20c   : > { %v1091_v21 = vmul.f32 %v1059_v6, %v952_v17  ;;  %v1107_v22 = vmul.f32 %v1075_v7, %v1016_v18  ;;  %1439 = vperm.xlu1 (!%p1864_p11), %2142, %v1409_v0   ;;  %v1155_v6 = vld [vmem:[#allocation5 + $0x38] sm:$0xff] (!%p1864_p11)  ;;  %v1412_v7 = vld [vmem:[%s3093_s2 + $0x30] sm:$0xff] (!%p1864_p11)  ;;  %v1414_v9 = vld [vmem:[%s3093_s2 + $0x40] sm:$0xff] (!%p1864_p11) }
 0x20d   : > { %v1117_v23 = vpack.c.bf16 %v1093_v15, %v1092_v12  ;;  %v1125_v24 = vpack.c.bf16 %v1109_v16, %v1108_v14  ;;  %1444 = vperm.xlu0 (!%p1864_p11), %2141, %v1410_v3   ;;  %v1152_v11 = vld [vmem:[#allocation5 + $0x20] sm:$0xff] (!%p1864_p11)  ;;  %v1154_v12 = vld [vmem:[#allocation5 + $0x30] sm:$0xff] (!%p1864_p11)  ;;  %v1157_v14 = vld [vmem:[#allocation5 + $0x48] sm:$0xff] (!%p1864_p11) }
 0x20e   : > { %v1116_v25 = vpack.c.bf16 %v1091_v21, %v1090_v19  ;;  %v1124_v26 = vpack.c.bf16 %v1107_v22, %v1106_v20  ;;  %v1159_v15 = vld [vmem:[#allocation5 + $0x58] sm:$0xff] (!%p1864_p11)  ;;  %v1416_v16 = vld [vmem:[%s3093_s2 + $0x50] sm:$0xff] (!%p1864_p11)  ;;  %v1418_v18 = vld [vmem:[%s3093_s2 + $0x60] sm:$0xff] (!%p1864_p11) }
 0x20f   : > { %1135 = vst [vmem:[%s2893_s9 + $0x38] sm:$0xff] %v1117_v23  ;;  %1143 = vst [vmem:[%s2893_s9 + $0x78] sm:$0xff] %v1125_v24  ;;  %v1417_v17 = vld [vmem:[%s3093_s2 + $0x58] sm:$0xff] (!%p1864_p11)  ;;  %v1419_v19 = vld [vmem:[%s3093_s2 + $0x68] sm:$0xff] (!%p1864_p11) }
 0x210   : > { %1134 = vst [vmem:[%s2893_s9 + $0x30] sm:$0xff] %v1116_v25  ;;  %1142 = vst [vmem:[%s2893_s9 + $0x70] sm:$0xff] %v1124_v26  ;;  %1449 = vperm.xlu1 (!%p1864_p11), %2142, %v1411_v4   ;;  %v1156_v20 = vld [vmem:[#allocation5 + $0x40] sm:$0xff] (!%p1864_p11)  ;;  %v1158_v21 = vld [vmem:[#allocation5 + $0x50] sm:$0xff] (!%p1864_p11) }
 0x211   : > { %1454 = vperm.xlu0 %2141, %v1412_v7   ;;  %v1161_v22 = vld [vmem:[#allocation5 + $0x68] sm:$0xff]  ;;  %v1163_v23 = vld [vmem:[#allocation5 + $0x78] sm:$0xff]  ;;  %v1420_v24 = vld [vmem:[%s3093_s2 + $0x70] sm:$0xff] }
 0x212   : > { %v1421_v25 = vld [vmem:[%s3093_s2 + $0x78] sm:$0xff]  ;;  %v1160_v26 = vld [vmem:[#allocation5 + $0x60] sm:$0xff] }
 0x214   : > { %1459 = vperm.xlu1 %2142, %v1413_v8  }
 0x215   : > { %1464 = vperm.xlu0 %2141, %v1414_v9  }
 0x217   : > { %v1188_v27 = vld [vmem:[#allocation3 + $0x40] sm:$0xff]  ;;  %v1189_v31 = vld [vmem:[#allocation3 + $0x48] sm:$0xff]  ;;  %v1190_v35 = vld [vmem:[#allocation3 + $0x50] sm:$0xff] }
 0x218   : > { %v1204_v28 = vld [vmem:[#allocation3 + $0xc0] sm:$0xff]  ;;  %1895 = vmatprep.subr.bf16.mxu0 %v1188_v27  ;;  %v1205_v32 = vld [vmem:[#allocation3 + $0xc8] sm:$0xff]  ;;  %v1206_v36 = vld [vmem:[#allocation3 + $0xd0] sm:$0xff]  ;;  %1469 = vperm.xlu1 %2142, %v1415_v10  }
 0x219   : > { %v1180_v29 = vld [vmem:[#allocation3] sm:$0xff]  ;;  %1959 = vmatprep.subr.bf16.mxu1 %v1204_v28  ;;  %v1181_v33 = vld [vmem:[#allocation3 + $0x8] sm:$0xff]  ;;  %v1182_v38 = vld [vmem:[#allocation3 + $0x10] sm:$0xff]  ;;  %1474 = vperm.xlu0 %2141, %v1416_v16  }
 0x21a   : > { %v1196_v30 = vld [vmem:[#allocation3 + $0x80] sm:$0xff]  ;;  %1896 = vmatpush3.bf16.msra.mxu0 %v1180_v29  ;;  %v1197_v34 = vld [vmem:[#allocation3 + $0x88] sm:$0xff]  ;;  %v1198_v39 = vld [vmem:[#allocation3 + $0x90] sm:$0xff] }
 0x21b   : > { %1960 = vmatpush3.bf16.msra.mxu1 %v1196_v30  ;;  %1897 = vmatprep.subr.bf16.mxu0 %v1189_v31  ;;  %v1191_v40 = vld [vmem:[#allocation3 + $0x58] sm:$0xff]  ;;  %v1192_v47 = vld [vmem:[#allocation3 + $0x60] sm:$0xff]  ;;  %v1193_v52 = vld [vmem:[#allocation3 + $0x68] sm:$0xff] }
 0x21c   : > { %1961 = vmatprep.subr.bf16.mxu1 %v1205_v32  ;;  %v1207_v42 = vld [vmem:[#allocation3 + $0xd8] sm:$0xff]  ;;  %v1208_v48 = vld [vmem:[#allocation3 + $0xe0] sm:$0xff]  ;;  %v1209_v53 = vld [vmem:[#allocation3 + $0xe8] sm:$0xff]  ;;  %1479 = vperm.xlu1 %2142, %v1417_v17  }
 0x21d   : > { %v1183_v44 = vld [vmem:[#allocation3 + $0x18] sm:$0xff]  ;;  %v1184_v49 = vld [vmem:[#allocation3 + $0x20] sm:$0xff]  ;;  %v1185_v54 = vld [vmem:[#allocation3 + $0x28] sm:$0xff]  ;;  %1484 = vperm.xlu0 %2141, %v1418_v18  }
 0x21e   : > { %1898 = vmatpush3.bf16.msra.mxu0 %v1181_v33  ;;  %v1199_v45 = vld [vmem:[#allocation3 + $0x98] sm:$0xff]  ;;  %v1200_v51 = vld [vmem:[#allocation3 + $0xa0] sm:$0xff]  ;;  %v1201_v55 = vld [vmem:[#allocation3 + $0xa8] sm:$0xff] }
 0x21f   : > { %1962 = vmatpush3.bf16.msra.mxu1 %v1197_v34  ;;  %1899 = vmatprep.subr.bf16.mxu0 %v1190_v35  ;;  %v1194_v56 = vld [vmem:[#allocation3 + $0x70] sm:$0xff]  ;;  %v1195_v61 = vld [vmem:[#allocation3 + $0x78] sm:$0xff]  ;;  %v1165_v28 = vld [vmem:[#allocation5 + $0x88] sm:$0xff] }
 0x220   : > { %1963 = vmatprep.subr.bf16.mxu1 %v1206_v36  ;;  %v1210_v13 = vld [vmem:[#allocation3 + $0xf0] sm:$0xff]  ;;  %v1211_v62 = vld [vmem:[#allocation3 + $0xf8] sm:$0xff]  ;;  %1489 = vperm.xlu1 %2142, %v1419_v19   ;;  %v1164_v30 = vld [vmem:[#allocation5 + $0x80] sm:$0xff] }
 0x221   : > { %v1186_v59 = vld [vmem:[#allocation3 + $0x30] sm:$0xff]  ;;  %v1187_v1 = vld [vmem:[#allocation3 + $0x38] sm:$0xff]  ;;  %1494 = vperm.xlu0 %2141, %v1420_v24   ;;  %v1169_v32 = vld [vmem:[#allocation5 + $0xa8] sm:$0xff] }
 0x222   : > { %1900 = vmatpush3.bf16.msra.mxu0 %v1182_v38  ;;  %v1202_v60 = vld [vmem:[#allocation3 + $0xb0] sm:$0xff]  ;;  %v1203_v2 = vld [vmem:[#allocation3 + $0xb8] sm:$0xff]  ;;  %v1168_v34 = vld [vmem:[#allocation5 + $0xa0] sm:$0xff] }
 0x223   : > { %1964 = vmatpush3.bf16.msra.mxu1 %v1198_v39  ;;  %1901 = vmatprep.subr.bf16.mxu0 %v1191_v40  ;;  %v1162_v27 = vld [vmem:[#allocation5 + $0x70] sm:$0xff]  ;;  %v1167_v29 = vld [vmem:[#allocation5 + $0x98] sm:$0xff]  ;;  %v1173_v36 = vld [vmem:[#allocation5 + $0xc8] sm:$0xff] }
 0x224   : > { %1965 = vmatprep.subr.bf16.mxu1 %v1207_v42  ;;  %1499 = vperm.xlu1 %2142, %v1421_v25   ;;  %v1166_v31 = vld [vmem:[#allocation5 + $0x90] sm:$0xff]  ;;  %v1171_v33 = vld [vmem:[#allocation5 + $0xb8] sm:$0xff]  ;;  %v1172_v38 = vld [vmem:[#allocation5 + $0xc0] sm:$0xff] }
 0x225   : > { %v1170_v35 = vld [vmem:[#allocation5 + $0xb0] sm:$0xff]  ;;  %v1177_v40 = vld [vmem:[#allocation5 + $0xe8] sm:$0xff]  ;;  %v1179_v42 = vld [vmem:[#allocation5 + $0xf8] sm:$0xff] }
 0x226   : > { %1902 = vmatpush3.bf16.msra.mxu0 %v1183_v44  ;;  %v1174_v39 = vld [vmem:[#allocation5 + $0xd0] sm:$0xff] }
 0x227   : > { %1966 = vmatpush3.bf16.msra.mxu1 %v1199_v45  ;;  %1903 = vmatprep.subr.bf16.mxu0 %v1192_v47  ;;  %v1178_v44 = vld [vmem:[#allocation5 + $0xf0] sm:$0xff] }
 0x228   : > { %1967 = vmatprep.subr.bf16.mxu1 %v1208_v48 }
 0x22a   : > { %1904 = vmatpush3.bf16.msra.mxu0 %v1184_v49 }
 0x22b   : > { %1968 = vmatpush3.bf16.msra.mxu1 %v1200_v51  ;;  %1905 = vmatprep.subr.bf16.mxu0 %v1193_v52 }
 0x22c   : > { %1969 = vmatprep.subr.bf16.mxu1 %v1209_v53 }
 0x22e   : > { %1906 = vmatpush3.bf16.msra.mxu0 %v1185_v54 }
 0x22f   : > { %1970 = vmatpush3.bf16.msra.mxu1 %v1201_v55  ;;  %1907 = vmatprep.subr.bf16.mxu0 %v1194_v56 }
 0x230   : > { %1971 = vmatprep.subr.bf16.mxu1 %v1210_v13 }
 0x232   : > { %1908 = vmatpush3.bf16.msra.mxu0 %v1186_v59 }
 0x233   : > { %1972 = vmatpush3.bf16.msra.mxu1 %v1202_v60  ;;  %1909 = vmatprep.subr.bf16.mxu0 %v1195_v61 }
 0x234   : > { %1973 = vmatprep.subr.bf16.mxu1 %v1211_v62 }
 0x236   : > { %1910 = vmatpush3.bf16.msra.mxu0 %v1187_v1 }
 0x237   : > { %1974 = vmatpush3.bf16.msra.mxu1 %v1203_v2 }
 0x239   : > { %1245 = vmatmul.mubr.bf16.vlgmr.msra.gmra.mrb[0].mxu0 %v1148_v5 }
 0x23a   : > { %1342 = vmatmul.mubr.bf16.vlgmr.msra.gmra.mrb[0].mxu1 %v1150_v41  ;;  %1252 = vmatprep.mubr.bf16.mxu0 %v1153_v50 }
 0x23b   : > { %1349 = vmatprep.mubr.bf16.mxu1 %v1155_v6 }
 0x241   : > { %1253 = vmatmul.mubr.bf16.gmra.mrb[4].mxu0 %v1152_v11 }
 0x242   : > { %1350 = vmatmul.mubr.bf16.gmra.mrb[4].mxu1 %v1154_v12  ;;  %1260 = vmatprep.mubr.bf16.mxu0 %v1157_v14 }
 0x243   : > { %1357 = vmatprep.mubr.bf16.mxu1 %v1159_v15 }
 0x249   : > { %1261 = vmatmul.mubr.bf16.gmra.mrb[8].mxu0 %v1156_v20 }
 0x24a   : > { %1358 = vmatmul.mubr.bf16.gmra.mrb[8].mxu1 %v1158_v21  ;;  %1268 = vmatprep.mubr.bf16.mxu0 %v1161_v22 }
 0x24b   : > { %1365 = vmatprep.mubr.bf16.mxu1 %v1163_v23 }
 0x251   : > { %1269 = vmatmul.mubr.bf16.gmra.mrb[12].mxu0 %v1160_v26 }
 0x252   : > { %1366 = vmatmul.mubr.bf16.gmra.mrb[12].mxu1 %v1162_v27  ;;  %1276 = vmatprep.mubr.bf16.mxu0 %v1165_v28 }
 0x253   : > { %1373 = vmatprep.mubr.bf16.mxu1 %v1167_v29 }
 0x259   : > { %1277 = vmatmul.mubr.bf16.gmra.mrb[16].mxu0 %v1164_v30 }
 0x25a   : > { %1374 = vmatmul.mubr.bf16.gmra.mrb[16].mxu1 %v1166_v31  ;;  %1284 = vmatprep.mubr.bf16.mxu0 %v1169_v32 }
 0x25b   : > { %1381 = vmatprep.mubr.bf16.mxu1 %v1171_v33 }
 0x261   : > { %1285 = vmatmul.mubr.bf16.gmra.mrb[20].mxu0 %v1168_v34 }
 0x262   : > { %1382 = vmatmul.mubr.bf16.gmra.mrb[20].mxu1 %v1170_v35  ;;  %1292 = vmatprep.mubr.bf16.mxu0 %v1173_v36 }
 0x263   : > { %1389 = vmatprep.mubr.bf16.mxu1 %v1175_v37 }
 0x269   : > { %1293 = vmatmul.mubr.bf16.gmra.mrb[24].mxu0 %v1172_v38 }
 0x26a   : > { %1390 = vmatmul.mubr.bf16.gmra.mrb[24].mxu1 %v1174_v39  ;;  %1300 = vmatprep.mubr.bf16.mxu0 %v1177_v40 }
 0x26b   : > { %1397 = vmatprep.mubr.bf16.mxu1 %v1179_v42 }
 0x271   : > { %1301 = vmatmul.mubr.bf16.gmra.mrb[28].mxu0 %v1176_v43 }
 0x272   : > { %1398 = vmatmul.mubr.bf16.gmra.mrb[28].mxu1 %v1178_v44 }
 0x283   : > { %v1425_v45 = vpop.permute.xlu0 %1424 }
 0x287   : > { %v1435_v62 = vpop.permute.xlu1 %1434 }
 0x288   : > { %v1430_v59 = vpop.permute.xlu0 %1429 }
 0x28b   : > { %v1440_v16 = vpop.permute.xlu1 %1439 }
 0x28c   : > { %v1445_v33 = vpop.permute.xlu0 %1444 }
 0x28f   : > { %v1450_v36 = vpop.permute.xlu1 %1449 }
 0x30c   : > { %v1911_v46 = vpop.f32.mrb[0].mxu0 }
 0x30d   : > { %v1975_v47 = vpop.f32.mrb[0].mxu1  ;;  %v1912_v48 = vpop.f32.mrb[1].mxu0 }
 0x30e   : > { %v1976_v49 = vpop.f32.mrb[1].mxu1  ;;  %v1913_v51 = vadd.f32 %v1912_v48, %v1911_v46  ;;  %v1914_v53 = vpop.f32.mrb[2].mxu0 }
 0x30f   : > { %v1977_v52 = vadd.f32 %v1976_v49, %v1975_v47  ;;  %v1978_v54 = vpop.f32.mrb[2].mxu1  ;;  %v1915_v55 = vpop.f32.mrb[3].mxu0 }
 0x310   : > { %v1979_v56 = vpop.f32.mrb[3].mxu1  ;;  %v1916_v57 = vadd.f32 %v1915_v55, %v1914_v53  ;;  %v1455_v55 = vpop.permute.xlu0 %1454 }
 0x311   : > { %v1344_v13 = vadd.f32 %v1977_v52, %v1913_v51  ;;  %v1980_v58 = vadd.f32 %v1979_v56, %v1978_v54 }
 0x313   : > { %v2968_v60 = vmul.f32 %v1425_v45, %v1344_v13  ;;  %v1347_v61 = vadd.f32 %v1980_v58, %v1916_v57  ;;  %v1460_v57 = vpop.permute.xlu1 %1459 }
 0x314   : > { %v1917_v0 = vpop.f32.mrb[4].mxu0 }
 0x315   : > { %v2970_v63 = vmul.f32 %v1430_v59, %v1347_v61  ;;  %v1981_v1 = vpop.f32.mrb[4].mxu1  ;;  %v1518_v2 = vmul.f32 %v2968_v60, %v2968_v60  ;;  %v1918_v3 = vpop.f32.mrb[5].mxu0 }
 0x316   : > { %v1982_v4 = vpop.f32.mrb[5].mxu1  ;;  %v1919_v5 = vadd.f32 %v1918_v3, %v1917_v0  ;;  %v1920_v50 = vpop.f32.mrb[6].mxu0 }
 0x317   : > { %v1983_v41 = vadd.f32 %v1982_v4, %v1981_v1  ;;  %v1984_v6 = vpop.f32.mrb[6].mxu1  ;;  %1534 = vadd.xlane.f32.xlu0 %v1518_v2  ;;  %v1519_v7 = vmul.f32 %v2970_v63, %v2970_v63  ;;  %v1921_v8 = vpop.f32.mrb[7].mxu0 }
 0x318   : > { %v1985_v9 = vpop.f32.mrb[7].mxu1  ;;  %v1922_v11 = vadd.f32 %v1921_v8, %v1920_v50 }
 0x319   : > { %v1352_v10 = vadd.f32 %v1983_v41, %v1919_v5  ;;  %v1986_v12 = vadd.f32 %v1985_v9, %v1984_v6  ;;  %1536 = vadd.xlane.f32.xlu1 %v1519_v7 }
 0x31b   : > { %v1355_v14 = vadd.f32 %v1986_v12, %v1922_v11  ;;  %v2976_v15 = vmul.f32 %v1435_v62, %v1352_v10  ;;  %v1465_v10 = vpop.permute.xlu0 %1464 }
 0x31c   : > { %v1923_v17 = vpop.f32.mrb[8].mxu0 }
 0x31d   : > { %v1987_v18 = vpop.f32.mrb[8].mxu1  ;;  %v1520_v19 = vmul.f32 %v2976_v15, %v2976_v15  ;;  %v2980_v20 = vmul.f32 %v1440_v16, %v1355_v14  ;;  %v1924_v21 = vpop.f32.mrb[9].mxu0 }
 0x31e   : > { %v1988_v22 = vpop.f32.mrb[9].mxu1  ;;  %v1925_v23 = vadd.f32 %v1924_v21, %v1923_v17  ;;  %v1926_v25 = vpop.f32.mrb[10].mxu0 }
 0x31f   : > { %v1989_v24 = vadd.f32 %v1988_v22, %v1987_v18  ;;  %v1990_v26 = vpop.f32.mrb[10].mxu1  ;;  %1538 = vadd.xlane.f32.xlu0 %v1520_v19  ;;  %v1927_v27 = vpop.f32.mrb[11].mxu0  ;;  %v1521_v32 = vmul.f32 %v2980_v20, %v2980_v20 }
 0x320   : > { %v1991_v28 = vpop.f32.mrb[11].mxu1  ;;  %v1928_v30 = vadd.f32 %v1927_v27, %v1926_v25  ;;  %v1470_v14 = vpop.permute.xlu1 %1469 }
 0x321   : > { %v1360_v29 = vadd.f32 %v1989_v24, %v1925_v23  ;;  %v1992_v31 = vadd.f32 %v1991_v28, %v1990_v26 }
 0x323   : > { %v1363_v34 = vadd.f32 %v1992_v31, %v1928_v30  ;;  %1540 = vadd.xlane.f32.xlu0 %v1521_v32  ;;  %v2984_v35 = vmul.f32 %v1445_v33, %v1360_v29  ;;  %v1475_v33 = vpop.permute.xlu0 %1474 }
 0x324   : > { %v1929_v37 = vpop.f32.mrb[12].mxu0 }
 0x325   : > { %v1993_v38 = vpop.f32.mrb[12].mxu1  ;;  %v1522_v39 = vmul.f32 %v2984_v35, %v2984_v35  ;;  %v2988_v40 = vmul.f32 %v1450_v36, %v1363_v34  ;;  %v1930_v42 = vpop.f32.mrb[13].mxu0 }
 0x326   : > { %v1994_v43 = vpop.f32.mrb[13].mxu1  ;;  %v1931_v44 = vadd.f32 %v1930_v42, %v1929_v37  ;;  %v1932_v46 = vpop.f32.mrb[14].mxu0 }
 0x327   : > { %v1995_v45 = vadd.f32 %v1994_v43, %v1993_v38  ;;  %v1996_v47 = vpop.f32.mrb[14].mxu1  ;;  %1542 = vadd.xlane.f32.xlu1 %v1522_v39  ;;  %v1523_v48 = vmul.f32 %v2988_v40, %v2988_v40  ;;  %v1933_v49 = vpop.f32.mrb[15].mxu0 }
 0x328   : > { %v1997_v51 = vpop.f32.mrb[15].mxu1  ;;  %v1934_v53 = vadd.f32 %v1933_v49, %v1932_v46  ;;  %v1480_v37 = vpop.permute.xlu1 %1479 }
 0x329   : > { %v1368_v52 = vadd.f32 %v1995_v45, %v1931_v44  ;;  %v1998_v54 = vadd.f32 %v1997_v51, %v1996_v47  ;;  %1544 = vadd.xlane.f32.xlu0 %v1523_v48 }
 0x32b   : > { %v1371_v56 = vadd.f32 %v1998_v54, %v1934_v53  ;;  %v2992_v13 = vmul.f32 %v1455_v55, %v1368_v52 }
 0x32c   : > { %v1935_v58 = vpop.f32.mrb[16].mxu0 }
 0x32d   : > { %v1999_v59 = vpop.f32.mrb[16].mxu1  ;;  %v1524_v61 = vmul.f32 %v2992_v13, %v2992_v13  ;;  %v2996_v62 = vmul.f32 %v1460_v57, %v1371_v56  ;;  %v1936_v0 = vpop.f32.mrb[17].mxu0 }
 0x32e   : > { %v2000_v1 = vpop.f32.mrb[17].mxu1  ;;  %v1937_v2 = vadd.f32 %v1936_v0, %v1935_v58  ;;  %v1938_v4 = vpop.f32.mrb[18].mxu0 }
 0x32f   : > { %v2001_v3 = vadd.f32 %v2000_v1, %v1999_v59  ;;  %v2002_v5 = vpop.f32.mrb[18].mxu1  ;;  %1546 = vadd.xlane.f32.xlu1 %v1524_v61  ;;  %v1525_v41 = vmul.f32 %v2996_v62, %v2996_v62  ;;  %v1939_v50 = vpop.f32.mrb[19].mxu0 }
 0x330   : > { %v2003_v6 = vpop.f32.mrb[19].mxu1  ;;  %v1940_v8 = vadd.f32 %v1939_v50, %v1938_v4  ;;  %v1485_v57 = vpop.permute.xlu0 %1484 }
 0x331   : > { %v1376_v7 = vadd.f32 %v2001_v3, %v1937_v2  ;;  %v2004_v9 = vadd.f32 %v2003_v6, %v2002_v5  ;;  %1548 = vadd.xlane.f32.xlu0 %v1525_v41  ;;  %v1490_v61 = vpop.permute.xlu1 %1489 }
 0x333   : > { %v1379_v11 = vadd.f32 %v2004_v9, %v1940_v8  ;;  %v3000_v12 = vmul.f32 %v1465_v10, %v1376_v7 }
 0x334   : > { %v1941_v16 = vpop.f32.mrb[20].mxu0 }
 0x335   : > { %v2005_v17 = vpop.f32.mrb[20].mxu1  ;;  %v1526_v18 = vmul.f32 %v3000_v12, %v3000_v12  ;;  %v3004_v19 = vmul.f32 %v1470_v14, %v1379_v11  ;;  %v1942_v21 = vpop.f32.mrb[21].mxu0 }
 0x336   : > { %v2006_v22 = vpop.f32.mrb[21].mxu1  ;;  %v1943_v23 = vadd.f32 %v1942_v21, %v1941_v16  ;;  %v1944_v25 = vpop.f32.mrb[22].mxu0 }
 0x337   : > { %v2007_v24 = vadd.f32 %v2006_v22, %v2005_v17  ;;  %v2008_v26 = vpop.f32.mrb[22].mxu1  ;;  %1550 = vadd.xlane.f32.xlu1 %v1526_v18  ;;  %v1527_v27 = vmul.f32 %v3004_v19, %v3004_v19  ;;  %v1945_v28 = vpop.f32.mrb[23].mxu0 }
 0x338   : > { %v2009_v29 = vpop.f32.mrb[23].mxu1  ;;  %v1946_v31 = vadd.f32 %v1945_v28, %v1944_v25  ;;  %v1495_v17 = vpop.permute.xlu0 %1494 }
 0x339   : > { %v1384_v30 = vadd.f32 %v2007_v24, %v1943_v23  ;;  %v2010_v32 = vadd.f32 %v2009_v29, %v2008_v26  ;;  %1552 = vadd.xlane.f32.xlu0 %v1527_v27  ;;  %v1500_v22 = vpop.permute.xlu1 %1499 }
 0x33b   : > { %v1387_v34 = vadd.f32 %v2010_v32, %v1946_v31  ;;  %v3008_v36 = vmul.f32 %v1475_v33, %v1384_v30 }
 0x33c   : > { %v1947_v38 = vpop.f32.mrb[24].mxu0 }
 0x33d   : > { %v2011_v39 = vpop.f32.mrb[24].mxu1  ;;  %v1528_v42 = vmul.f32 %v3008_v36, %v3008_v36  ;;  %v3012_v43 = vmul.f32 %v1480_v37, %v1387_v34  ;;  %v1948_v44 = vpop.f32.mrb[25].mxu0  ;;  %v1630_v34 = vld [vmem:[#allocation8] sm:$0xff] }
 0x33e   : > { %v2012_v45 = vpop.f32.mrb[25].mxu1  ;;  %v1949_v46 = vadd.f32 %v1948_v44, %v1947_v38  ;;  %v1950_v48 = vpop.f32.mrb[26].mxu0 }
 0x33f   : > { %v2013_v47 = vadd.f32 %v2012_v45, %v2011_v39  ;;  %v2014_v49 = vpop.f32.mrb[26].mxu1  ;;  %1554 = vadd.xlane.f32.xlu1 %v1528_v42  ;;  %v1529_v51 = vmul.f32 %v3012_v43, %v3012_v43  ;;  %v1951_v52 = vpop.f32.mrb[27].mxu0  ;;  %v1631_v42 = vld [vmem:[#allocation8 + $0x8] sm:$0xff] }
 0x340   : > { %v2015_v53 = vpop.f32.mrb[27].mxu1  ;;  %v1952_v55 = vadd.f32 %v1951_v52, %v1950_v48 }
 0x341   : > { %v1392_v54 = vadd.f32 %v2013_v47, %v1949_v46  ;;  %v2016_v56 = vadd.f32 %v2015_v53, %v2014_v49  ;;  %1556 = vadd.xlane.f32.xlu0 %v1529_v51 }
 0x343   : > { %v1395_v58 = vadd.f32 %v2016_v56, %v1952_v55  ;;  %v3016_v59 = vmul.f32 %v1485_v57, %v1392_v54  ;;  %v1632_v54 = vld [vmem:[#allocation8 + $0x10] sm:$0xff] }
 0x344   : > { %v1953_v0 = vpop.f32.mrb[28].mxu0 }
 0x345   : > { %v2017_v1 = vpop.f32.mrb[28].mxu1  ;;  %v1530_v2 = vmul.f32 %v3016_v59, %v3016_v59  ;;  %v3020_v3 = vmul.f32 %v1490_v61, %v1395_v58  ;;  %v1954_v4 = vpop.f32.mrb[29].mxu0  ;;  %v1633_v58 = vld [vmem:[#allocation8 + $0x18] sm:$0xff] }
 0x346   : > { %v2018_v5 = vpop.f32.mrb[29].mxu1  ;;  %v1955_v41 = vadd.f32 %v1954_v4, %v1953_v0  ;;  %v1956_v6 = vpop.f32.mrb[30].mxu0 }
 0x347   : > { %v2019_v50 = vadd.f32 %v2018_v5, %v2017_v1  ;;  %v2020_v7 = vpop.f32.mrb[30].mxu1  ;;  %1558 = vadd.xlane.f32.xlu1 %v1530_v2  ;;  %v1531_v8 = vmul.f32 %v3020_v3, %v3020_v3  ;;  %v1957_v9 = vpop.f32.mrb[31].mxu0 }
 0x348   : > { %v2021_v10 = vpop.f32.mrb[31].mxu1  ;;  %v1958_v14 = vadd.f32 %v1957_v9, %v1956_v6  ;;  %v1635_v6 = vld [vmem:[#allocation8 + $0x28] sm:$0xff] }
 0x349   : > { %v1400_v11 = vadd.f32 %v2019_v50, %v1955_v41  ;;  %v2022_v16 = vadd.f32 %v2021_v10, %v2020_v7  ;;  %1560 = vadd.xlane.f32.xlu0 %v1531_v8  ;;  %v1634_v41 = vld [vmem:[#allocation8 + $0x20] sm:$0xff] }
 0x34b   : > { %v1403_v18 = vadd.f32 %v2022_v16, %v1958_v14  ;;  %v3024_v21 = vmul.f32 %v1495_v17, %v1400_v11 }
 0x34d   : > { %v1532_v23 = vmul.f32 %v3024_v21, %v3024_v21  ;;  %v3028_v24 = vmul.f32 %v1500_v22, %v1403_v18  ;;  %v1636_v18 = vld [vmem:[#allocation8 + $0x30] sm:$0xff] }
 0x34f   : > { %1562 = vadd.xlane.f32.xlu1 %v1532_v23  ;;  %v1533_v25 = vmul.f32 %v3028_v24, %v3028_v24  ;;  %v1637_v23 = vld [vmem:[#allocation8 + $0x38] sm:$0xff] }
 0x351   : > { %1564 = vadd.xlane.f32.xlu0 %v1533_v25 }
 0x3a4   : > { %v1535_v26 = vpop.xlane.xlu0 %1534 }
 0x3a5   : > { %v1566_v27 = vmax.f32 %v1535_v26, 1e-24 }
 0x3a6   : > { %v1537_v28 = vpop.xlane.xlu1 %1536 }
 0x3a7   : > { %2143 = vrsqrt.f32 %v1566_v27  ;;  %v1567_v29 = vmax.f32 %v1537_v28, 1e-24 }
 0x3a9   : > { %2145 = vrsqrt.f32 %v1567_v29 }
 0x3ac   : > { %v1539_v30 = vpop.xlane.xlu0 %1538 }
 0x3ad   : > { %v1568_v31 = vmax.f32 %v1539_v30, 1e-24 }
 0x3af   : > { %2147 = vrsqrt.f32 %v1568_v31 }
 0x3b0   : > { %v1541_v32 = vpop.xlane.xlu0 %1540 }
 0x3b1   : > { %v2144_v33 = vpop.eup %2143  ;;  %v1569_v37 = vmax.f32 %v1541_v32, 1e-24 }
 0x3b2   : > { %v1598_v38 = vmul.f32 %v2144_v33, %v2968_v60  ;;  %v1638_v33 = vld [vmem:[#allocation8 + $0x40] sm:$0xff] }
 0x3b3   : > { %v2146_v39 = vpop.eup %2145  ;;  %2149 = vrsqrt.f32 %v1569_v37  ;;  %v1639_v37 = vld [vmem:[#allocation8 + $0x48] sm:$0xff] }
 0x3b4   : > { %v1646_v44 = vadd.f32 %v1630_v34, %v1598_v38  ;;  %v1599_v45 = vmul.f32 %v2146_v39, %v2970_v63  ;;  %v1543_v46 = vpop.xlane.xlu1 %1542 }
 0x3b5   : > { %v1570_v47 = vmax.f32 %v1543_v46, 1e-24 }
 0x3b6   : > { %1662 = vst [vmem:[#allocation8] sm:$0xff] %v1646_v44  ;;  %v1614_v48 = vpack.c.bf16 %v1599_v45, %v1598_v38  ;;  %v1647_v49 = vadd.f32 %v1631_v42, %v1599_v45  ;;  %v1545_v51 = vpop.xlane.xlu0 %1544 }
 0x3b7   : > { %2151 = vrsqrt.f32 %v1570_v47  ;;  %v1571_v52 = vmax.f32 %v1545_v51, 1e-24 }
 0x3b8   : > { %1622 = vst [vmem:[#allocation2] sm:$0xff] %v1614_v48  ;;  %1663 = vst [vmem:[#allocation8 + $0x8] sm:$0xff] %v1647_v49  ;;  %v1640_v49 = vld [vmem:[#allocation8 + $0x50] sm:$0xff] }
 0x3b9   : > { %v2148_v53 = vpop.eup %2147  ;;  %2153 = vrsqrt.f32 %v1571_v52  ;;  %v1641_v52 = vld [vmem:[#allocation8 + $0x58] sm:$0xff] }
 0x3ba   : > { %v1600_v60 = vmul.f32 %v2148_v53, %v2976_v15 }
 0x3bc   : > { %v1648_v55 = vadd.f32 %v1632_v54, %v1600_v60  ;;  %v1547_v56 = vpop.xlane.xlu1 %1546 }
 0x3bd   : > { %v2150_v57 = vpop.eup %2149  ;;  %v1572_v63 = vmax.f32 %v1547_v56, 1e-24 }
 0x3be   : > { %1664 = vst [vmem:[#allocation8 + $0x10] sm:$0xff] %v1648_v55  ;;  %v1601_v61 = vmul.f32 %v2150_v57, %v2980_v20  ;;  %v1549_v0 = vpop.xlane.xlu0 %1548 }
 0x3bf   : > { %2155 = vrsqrt.f32 %v1572_v63  ;;  %v1573_v1 = vmax.f32 %v1549_v0, 1e-24 }
 0x3c0   : > { %v1615_v2 = vpack.c.bf16 %v1601_v61, %v1600_v60  ;;  %v1649_v4 = vadd.f32 %v1633_v58, %v1601_v61  ;;  %v1642_v61 = vld [vmem:[#allocation8 + $0x60] sm:$0xff] }
 0x3c1   : > { %v2152_v5 = vpop.eup %2151  ;;  %2157 = vrsqrt.f32 %v1573_v1  ;;  %v1643_v1 = vld [vmem:[#allocation8 + $0x68] sm:$0xff] }
 0x3c2   : > { %1623 = vst [vmem:[#allocation2 + $0x8] sm:$0xff] %v1615_v2  ;;  %1665 = vst [vmem:[#allocation8 + $0x18] sm:$0xff] %v1649_v4  ;;  %v1602_v15 = vmul.f32 %v2152_v5, %v2984_v35 }
 0x3c3   : > { %v2154_v50 = vpop.eup %2153 }
 0x3c4   : > { %v1650_v7 = vadd.f32 %v1634_v41, %v1602_v15  ;;  %v1603_v8 = vmul.f32 %v2154_v50, %v2988_v40  ;;  %v1551_v9 = vpop.xlane.xlu1 %1550 }
 0x3c5   : > { %v1574_v10 = vmax.f32 %v1551_v9, 1e-24 }
 0x3c6   : > { %1666 = vst [vmem:[#allocation8 + $0x20] sm:$0xff] %v1650_v7  ;;  %v1616_v20 = vpack.c.bf16 %v1603_v8, %v1602_v15  ;;  %v1651_v11 = vadd.f32 %v1635_v6, %v1603_v8  ;;  %v1553_v14 = vpop.xlane.xlu0 %1552  ;;  %v1644_v15 = vld [vmem:[#allocation8 + $0x70] sm:$0xff]  ;;  %v1645_v7 = vld [vmem:[#allocation8 + $0x78] sm:$0xff] }
 0x3c7   : > { %2159 = vrsqrt.f32 %v1574_v10  ;;  %v1575_v16 = vmax.f32 %v1553_v14, 1e-24 }
 0x3c8   : > { %1624 = vst [vmem:[#allocation2 + $0x10] sm:$0xff] %v1616_v20  ;;  %1667 = vst [vmem:[#allocation8 + $0x28] sm:$0xff] %v1651_v11 }
 0x3c9   : > { %v2156_v17 = vpop.eup %2155  ;;  %2161 = vrsqrt.f32 %v1575_v16 }
 0x3ca   : > { %v1604_v35 = vmul.f32 %v2156_v17, %v2992_v13 }
 0x3cb   : > { %v2158_v22 = vpop.eup %2157 }
 0x3cc   : > { %v1652_v25 = vadd.f32 %v1636_v18, %v1604_v35  ;;  %v1605_v40 = vmul.f32 %v2158_v22, %v2996_v62  ;;  %v1555_v26 = vpop.xlane.xlu1 %1554 }
 0x3cd   : > { %v1576_v27 = vmax.f32 %v1555_v26, 1e-24 }
 0x3ce   : > { %1668 = vst [vmem:[#allocation8 + $0x30] sm:$0xff] %v1652_v25  ;;  %v1617_v28 = vpack.c.bf16 %v1605_v40, %v1604_v35  ;;  %v1653_v29 = vadd.f32 %v1637_v23, %v1605_v40  ;;  %v1557_v30 = vpop.xlane.xlu0 %1556 }
 0x3cf   : > { %2163 = vrsqrt.f32 %v1576_v27  ;;  %v1577_v31 = vmax.f32 %v1557_v30, 1e-24 }
 0x3d0   : > { %1625 = vst [vmem:[#allocation2 + $0x18] sm:$0xff] %v1617_v28  ;;  %1669 = vst [vmem:[#allocation8 + $0x38] sm:$0xff] %v1653_v29 }
 0x3d1   : > { %v2160_v32 = vpop.eup %2159  ;;  %2165 = vrsqrt.f32 %v1577_v31 }
 0x3d2   : > { %v1606_v13 = vmul.f32 %v2160_v32, %v3000_v12 }
 0x3d3   : > { %v2162_v34 = vpop.eup %2161 }
 0x3d4   : > { %v1654_v38 = vadd.f32 %v1638_v33, %v1606_v13  ;;  %v1607_v62 = vmul.f32 %v2162_v34, %v3004_v19  ;;  %v1559_v39 = vpop.xlane.xlu1 %1558 }
 0x3d5   : > { %v1578_v42 = vmax.f32 %v1559_v39, 1e-24 }
 0x3d6   : > { %1670 = vst [vmem:[#allocation8 + $0x40] sm:$0xff] %v1654_v38  ;;  %v1618_v44 = vpack.c.bf16 %v1607_v62, %v1606_v13  ;;  %v1655_v45 = vadd.f32 %v1639_v37, %v1607_v62  ;;  %v1561_v46 = vpop.xlane.xlu0 %1560 }
 0x3d7   : > { %2167 = vrsqrt.f32 %v1578_v42  ;;  %v1579_v47 = vmax.f32 %v1561_v46, 1e-24 }
 0x3d8   : > { %1626 = vst [vmem:[#allocation2 + $0x20] sm:$0xff] %v1618_v44  ;;  %1671 = vst [vmem:[#allocation8 + $0x48] sm:$0xff] %v1655_v45 }
 0x3d9   : > { %v2164_v48 = vpop.eup %2163  ;;  %2169 = vrsqrt.f32 %v1579_v47 }
 0x3da   : > { %v1608_v12 = vmul.f32 %v2164_v48, %v3008_v36 }
 0x3db   : > { %v2166_v51 = vpop.eup %2165 }
 0x3dc   : > { %v1656_v53 = vadd.f32 %v1640_v49, %v1608_v12  ;;  %v1609_v19 = vmul.f32 %v2166_v51, %v3012_v43  ;;  %v1563_v54 = vpop.xlane.xlu1 %1562 }
 0x3dd   : > { %v1580_v60 = vmax.f32 %v1563_v54, 1e-24 }
 0x3de   : > { %1672 = vst [vmem:[#allocation8 + $0x50] sm:$0xff] %v1656_v53  ;;  %v1619_v55 = vpack.c.bf16 %v1609_v19, %v1608_v12  ;;  %v1657_v56 = vadd.f32 %v1641_v52, %v1609_v19  ;;  %v1565_v57 = vpop.xlane.xlu0 %1564 }
 0x3df   : > { %2171 = vrsqrt.f32 %v1580_v60  ;;  %v1581_v58 = vmax.f32 %v1565_v57, 1e-24 }
 0x3e0   : > { %1627 = vst [vmem:[#allocation2 + $0x28] sm:$0xff] %v1619_v55  ;;  %1673 = vst [vmem:[#allocation8 + $0x58] sm:$0xff] %v1657_v56 }
 0x3e1   : > { %v2168_v63 = vpop.eup %2167  ;;  %2173 = vrsqrt.f32 %v1581_v58 }
 0x3e2   : > { %v1610_v36 = vmul.f32 %v2168_v63, %v3016_v59 }
 0x3e3   : > { %v2170_v0 = vpop.eup %2169 }
 0x3e4   : > { %v1658_v2 = vadd.f32 %v1642_v61, %v1610_v36  ;;  %v1611_v43 = vmul.f32 %v2170_v0, %v3020_v3 }
 0x3e6   : > { %1674 = vst [vmem:[#allocation8 + $0x60] sm:$0xff] %v1658_v2  ;;  %v1620_v4 = vpack.c.bf16 %v1611_v43, %v1610_v36  ;;  %v1659_v5 = vadd.f32 %v1643_v1, %v1611_v43 }
 0x3e8   : > { %1628 = vst [vmem:[#allocation2 + $0x30] sm:$0xff] %v1620_v4  ;;  %1675 = vst [vmem:[#allocation8 + $0x68] sm:$0xff] %v1659_v5 }
 0x3e9   : > { %v2172_v41 = vpop.eup %2171 }
 0x3ea   : > { %v1612_v50 = vmul.f32 %v2172_v41, %v3024_v21 }
 0x3eb   : > { %v2174_v6 = vpop.eup %2173 }
 0x3ec   : > { %v1660_v8 = vadd.f32 %v1644_v15, %v1612_v50  ;;  %v1613_v9 = vmul.f32 %v2174_v6, %v3028_v24 }
 0x3ee   : > { %1676 = vst [vmem:[#allocation8 + $0x70] sm:$0xff] %v1660_v8  ;;  %v1621_v59 = vpack.c.bf16 %v1613_v9, %v1612_v50  ;;  %v1661_v10 = vadd.f32 %v1645_v7, %v1613_v9 }
 0x3f0   : > { %1629 = vst [vmem:[#allocation2 + $0x38] sm:$0xff] %v1621_v59  ;;  %1677 = vst [vmem:[#allocation8 + $0x78] sm:$0xff] %v1661_v10 }
 0x3f1 PF: > { %p3050_p12 = scmp.eq.s32.totalorder %s1786_s23, 3  ;;  %s2252_s30 = smov [#allocation8]  }
 0x3f2   : > { %s1684_s6 = sshll.u32 %s2252_s30, 4  ;;  %s1685_s6 = int_to_ptr.vmem [resolvable:$true] %s1684_s6 }
 0x3f3   : > { %s2175_s8 = scalar_lea.vmem %s1685_s6, 2048  ;;  %p2182_p2 = scmp.lt.s32.totalorder %s1685_s6, %s1685_s6 }
 0x3f4   : > { %p2176_p13 = scmp.ne.s32.totalorder %s1685_s6, %s2175_s8  ;;  %p2183_p3 = scmp.lt.s32.totalorder %s2175_s8, %s2175_s8 }
 0x3f6   : > { %p2177_p0 = pnand %p2176_p13, %p3050_p12  ;;  %p2184_p4 = por %p2183_p3, %p2182_p2 }
 0x3f8   : > { %p2178_p1 = pneg %p2177_p0 }
 0x3fa   : > { %p2185_p5 = pnand %p2184_p4, %p2178_p1 }
 0x3fc   : > { %2188 = shalt.err (!%p2185_p5)
}
 0x3fd   : > { %s2189_s23 = scalar_lea.hbm %s3096_s5, 2048 }
 0x3fe   : > { %p2190_p6 = scmp.ne.s32.totalorder %s3096_s5, %s2189_s23  ;;  %p2195_p9 = scmp.lt.u32.totalorder %s2189_s23, %s3096_s5 }
 0x400   : > { %p2191_p7 = pnand %p2190_p6, %p3050_p12 }
 0x402   : > { %p2192_p8 = pneg %p2191_p7 }
 0x404   : > { %p2197_p10 = pnand %p2195_p9, %p2192_p8 }
 0x406   : > { %2200 = shalt.err (!%p2197_p10)
}
 0x407   : > { %s2253_s14 = smov 128   ;;  %s2254_s15 = smov 8  }
 0x408   : > { %2088 = dma.vmem_to_hbm [thread:$0]  (%p3050_p12), %s1685_s6, 2048, %s3096_s5, [#allocation9], %s2253_s14, %s2253_s14, %s2254_s15  }
 0x409   : > { %2226 = dma.done.wait (%p3050_p12), [#allocation9], 2048  }
 0x40a   : > { %2228 = vsyncadd (%p3050_p12), [#allocation9], 4294965248 }
 0x40b PF: > { %s16_s22 = sadd.s32 1, %s2247_s22   ;;  %s3113_s18 = smov %s2239_s20 }
 0x40c   : > { %p13_p11 = scmp.ge.s32.totalorder %s16_s22, 6   ;;  %s3114_s19 = smov %s2243_s21 }
 0x40d   : > { %s3115_s20 = smov %s3118_s24  ;;  %s3116_s21 = smov %s3122_s25 }
 0x40e   :  { %15 = sbr.rel (!%p13_p11) target bundleno = 3 (0x3), region = 165 }
 0x415   :  { %1700 = vsyncpa [#allocation9], 1 }
 0x416   :  { %1702 = vsyncpa [#allocation9 + $0x1], 1 }
 0x417   :  { %1703 = vsyncmov [#allocation7] }
 0x41a   :  { %s1704_s27 = vpop.sfrf %1703 }
 0x41b   :  { %p1869_p12 = scmp.ne.s32.totalorder %s1704_s27, 0 }
 0x41d   :  { %1708 = shalt.err (%p1869_p12)  }
 0x41e   :  { %1710 = vsyncmov [#allocation7 + $0x1] }
 0x421   :  { %s1711_s10 = vpop.sfrf %1710 }
 0x422   :  { %p1870_p13 = scmp.ne.s32.totalorder %s1711_s10, 0 }
 0x424   :  { %1715 = shalt.err (%p1870_p13)  }

</bundles_post_ra>
